<compile_context>
chip_gen: v7x
topology: tpu7x:2x2x1
jax: 0.10.0
libtpu: 0.0.40
codegen_flags: <defaults>
</compile_context>

<pallas_src>
from functools import partial

import jax
import jax.numpy as jnp
from jax import lax
from jax.experimental import pallas as pl
from jax.experimental.pallas import tpu as pltpu


# ----------------------------------------------------------------------------
# Fused kernel: dual-GRU recurrence + heads + attention + out-proj + CE-sum
# ----------------------------------------------------------------------------
def fused_kernel(x_ref, wgru_ref, bgru_ref, whead_ref, wout_ref, bpost_ref,
                 y_ref, loss_ref, *, B, T, Din, H, L, C):
    H2, G = 2 * H, 6 * H
    Din2 = 2 * Din

    # Packed GRU weights (bf16): rows 0:2Din input proj, rows 2Din:2Din+2H
    # recurrent proj. Gate/branch lane layout: [r_q|r_d | z_q|z_d | n_q|n_d].
    wih = wgru_ref[0:Din2, :]                                   # (2Din, 6H)
    whh = wgru_ref[Din2:Din2 + H2, :]                           # (2H, 6H)
    bgi = bgru_ref[:, 0:G]                                      # (1, 6H) f32
    bhn = jnp.broadcast_to(bgru_ref[:, G:G + H2], (B, H2))      # (B, 2H) hoisted

    # Hoisted input projection: ONE matmul over the whole time-major slab for
    # BOTH GRUs (b_ih, plus b_hh for r/z, already folded into bgi).
    gi = jnp.dot(x_ref[...], wih, preferred_element_type=jnp.float32) + bgi

    h = jnp.zeros((B, H2), jnp.float32)                         # [h_qry | h_doc]
    hd3 = None
    for t in range(T):                       # static, fully unrolled (T small)
        g = gi[t * B:(t + 1) * B, :]                            # (B, 6H)
        gh = jnp.dot(h.astype(jnp.bfloat16), whh,
                     preferred_element_type=jnp.float32)        # (B, 6H)
        r = jax.nn.sigmoid(g[:, 0:H2] + gh[:, 0:H2])
        z = jax.nn.sigmoid(g[:, H2:2 * H2] + gh[:, H2:2 * H2])
        n = jnp.tanh(g[:, 2 * H2:3 * H2] + r * (gh[:, 2 * H2:3 * H2] + bhn))
        h = (1.0 - z) * n + z * h
        if t == 3:
            hd3 = h[:, H:H2]                                    # out_doc[:, 3]
    hq = h[:, 0:H]                                              # out_qry[:, -1]
    hdl = h[:, H:H2]                                            # out_doc[:, -1]

    # All four heads in ONE matmul: [hq; hd3; hdl] @ [wqk|wqv|wdk|wdv].
    stacked = jnp.concatenate([hq, hd3, hdl], axis=0).astype(jnp.bfloat16)
    heads = jnp.dot(stacked, whead_ref[...],
                    preferred_element_type=jnp.float32)
    heads = jnp.maximum(heads + bpost_ref[:, 0:4 * L], 0.0)     # ReLU heads
    qk = heads[0:B, 0:L]
    qv = heads[0:B, L:2 * L]
    dk = heads[B:2 * B, 2 * L:3 * L]
    dv = heads[2 * B:3 * B, 3 * L:4 * L]

    # Attention over the doc batch (no materialized transpose).
    att = lax.dot_general(qk.astype(jnp.bfloat16), dk.astype(jnp.bfloat16),
                          (((1,), (1,)), ((), ())),
                          preferred_element_type=jnp.float32)   # (B, B)
    att = jnp.exp(att - jnp.max(att, axis=-1, keepdims=True))
    att = att * pl.reciprocal(jnp.sum(att, axis=-1, keepdims=True), approx=True)
    dvw = jnp.dot(att.astype(jnp.bfloat16), dv.astype(jnp.bfloat16),
                  preferred_element_type=jnp.float32)           # (B, L)

    # Fused output projection: [qv | dvw] @ vstack(woq, wod) + bout.
    fused = jnp.concatenate([qv, dvw], axis=-1).astype(jnp.bfloat16)
    logits = (jnp.dot(fused, wout_ref[...], preferred_element_type=jnp.float32)
              + bpost_ref[:, 4 * L:4 * L + C])                  # (B, C)

    # cross_entropy(..., reduction='sum')
    m = jnp.max(logits, axis=-1, keepdims=True)
    lse = jnp.log(jnp.sum(jnp.exp(logits - m), axis=-1, keepdims=True)) + m
    classes = lax.broadcasted_iota(jnp.int32, (B, C), 1)
    picked = jnp.sum(jnp.where(classes == y_ref[...], logits, 0.0),
                     axis=-1, keepdims=True)
    loss_ref[0, 0] = jnp.sum(lse - picked)


# ----------------------------------------------------------------------------
# One-time parameter packing (outside the jitted forward)
# ----------------------------------------------------------------------------
def pack_params(params):
    H = params["q_whh"].shape[0]
    Din = params["q_wih"].shape[0]

    def gate(w, g):
        return w[..., g * H:(g + 1) * H]

    def block(wq, wd, g, rows):
        # block-diagonal per-gate packing for the [qry | doc] combined lanes
        z = jnp.zeros((rows, H), jnp.float32)
        return jnp.concatenate(
            [jnp.concatenate([gate(wq, g), z], axis=1),
             jnp.concatenate([z, gate(wd, g)], axis=1)], axis=0)   # (2*rows, 2H)

    wih_c = jnp.concatenate(
        [block(params["q_wih"], params["d_wih"], g, Din) for g in range(3)],
        axis=1)                                                    # (2Din, 6H)
    whh_c = jnp.concatenate(
        [block(params["q_whh"], params["d_whh"], g, H) for g in range(3)],
        axis=1)                                                    # (2H, 6H)
    w_gru = jnp.concatenate([wih_c, whh_c], axis=0).astype(jnp.bfloat16)

    def bias(bq, bd, g):
        return jnp.concatenate([gate(bq, g), gate(bd, g)], axis=1)  # (1, 2H)

    # r/z: b_ih + b_hh pre-summed; n: b_ih only (b_hh_n stays gated by r).
    b_gi = jnp.concatenate(
        [bias(params["q_bih"], params["d_bih"], 0)
         + bias(params["q_bhh"], params["d_bhh"], 0),
         bias(params["q_bih"], params["d_bih"], 1)
         + bias(params["q_bhh"], params["d_bhh"], 1),
         bias(params["q_bih"], params["d_bih"], 2)], axis=1)        # (1, 6H)
    b_hn = bias(params["q_bhh"], params["d_bhh"], 2)                 # (1, 2H)
    b_gru = jnp.concatenate([b_gi, b_hn], axis=1)                    # (1, 8H)

    w_head = jnp.concatenate([params["wqk"], params["wqv"],
                              params["wdk"], params["wdv"]],
                             axis=1).astype(jnp.bfloat16)            # (H, 4L)
    b_head = jnp.concatenate([params["bqk"], params["bqv"],
                              params["bdk"], params["bdv"]], axis=1)  # (1, 4L)
    w_out = jnp.concatenate([params["wout_q"], params["wout_d"]],
                            axis=0).astype(jnp.bfloat16)             # (2L, C)
    b_post = jnp.concatenate([b_head, params["bout"]], axis=1)       # (1, 4L+C)

    return {"w_gru": w_gru, "b_gru": b_gru, "w_head": w_head,
            "w_out": w_out, "b_post": b_post,
            "loc_emb": params["loc_emb"], "time_emb": params["time_emb"]}


# ----------------------------------------------------------------------------
# Forward wrapper (glue: embedding gather, layout prep, pallas_call)
# ----------------------------------------------------------------------------
@jax.jit
def local_predictor_forward(packed, x_loc_qry, x_t_qry, x_loc_doc, x_t_doc, y):
    H = packed["b_gru"].shape[1] // 8
    Din = (packed["w_gru"].shape[0] - 2 * H) // 2
    L = packed["w_head"].shape[1] // 4
    C = packed["w_out"].shape[1]
    B, T = x_loc_qry.shape
    # TODO(synk): unequal qry/doc sequence lengths would need a tail loop.
    assert x_loc_doc.shape[1] == T, "fused recurrence assumes Tq == Td"
    assert T >= 4, "doc sequence must have >= 4 steps"

    # Embedding gather (XLA glue). Int transpose first so the slab is produced
    # directly time-major; qry and doc branches concatenated on lanes so the
    # fused GRU input projection is a single matmul.
    xl_q, xt_q = jnp.transpose(x_loc_qry), jnp.transpose(x_t_qry)
    xl_d, xt_d = jnp.transpose(x_loc_doc), jnp.transpose(x_t_doc)
    emb = jnp.concatenate([packed["loc_emb"][xl_q], packed["time_emb"][xt_q],
                           packed["loc_emb"][xl_d], packed["time_emb"][xt_d]],
                          axis=-1)                              # (T, B, 2*Din)
    x = emb.reshape(T * B, 2 * Din).astype(jnp.bfloat16)

    y2d = y.astype(jnp.int32).reshape(B, 1)

    kern = partial(fused_kernel, B=B, T=T, Din=Din, H=H, L=L, C=C)
    loss = pl.pallas_call(
        kern,
        out_shape=jax.ShapeDtypeStruct((1, 1), jnp.float32),
        in_specs=[pl.BlockSpec(memory_space=pltpu.MemorySpace.VMEM)] * 7,
        out_specs=pl.BlockSpec(memory_space=pltpu.MemorySpace.SMEM),
    )(x, packed["w_gru"], packed["b_gru"], packed["w_head"],
      packed["w_out"], packed["b_post"], y2d)
    return loss[0, 0]


# ----------------------------------------------------------------------------
# Pure-JAX f32 reference (mirrors the PyTorch math) for the correctness check
# ----------------------------------------------------------------------------
def _gru_ref(x_btd, w_ih, w_hh, b_ih, b_hh):
    B, T, _ = x_btd.shape
    H = w_hh.shape[0]
    h = jnp.zeros((B, H), jnp.float32)
    outs = []
    for t in range(T):
        gi = x_btd[:, t] @ w_ih + b_ih
        gh = h @ w_hh + b_hh
        i_r, i_z, i_n = gi[:, :H], gi[:, H:2 * H], gi[:, 2 * H:]
        h_r, h_z, h_n = gh[:, :H], gh[:, H:2 * H], gh[:, 2 * H:]
        r = jax.nn.sigmoid(i_r + h_r)
        z = jax.nn.sigmoid(i_z + h_z)
        n = jnp.tanh(i_n + r * h_n)
        h = (1.0 - z) * n + z * h
        outs.append(h)
    return jnp.stack(outs, axis=1)


def _reference_forward(params, x_loc_qry, x_t_qry, x_loc_doc, x_t_doc, y):
    emb_q = jnp.concatenate([params["loc_emb"][x_loc_qry],
                             params["time_emb"][x_t_qry]], axis=-1)
    emb_d = jnp.concatenate([params["loc_emb"][x_loc_doc],
                             params["time_emb"][x_t_doc]], axis=-1)
    hq = _gru_ref(emb_q, params["q_wih"], params["q_whh"],
                  params["q_bih"][0], params["q_bhh"][0])
    hd = _gru_ref(emb_d, params["d_wih"], params["d_whh"],
                  params["d_bih"][0], params["d_bhh"][0])
    relu = lambda v: jnp.maximum(v, 0.0)
    qk = relu(hq[:, -1] @ params["wqk"] + params["bqk"])
    qv = relu(hq[:, -1] @ params["wqv"] + params["bqv"])
    dk = relu(hd[:, 3] @ params["wdk"] + params["bdk"])
    dv = relu(hd[:, -1] @ params["wdv"] + params["bdv"])
    att = jax.nn.softmax(qk @ dk.T, axis=-1)
    dvw = att @ dv
    logits = qv @ params["wout_q"] + dvw @ params["wout_d"] + params["bout"]
    logp = jax.nn.log_softmax(logits, axis=-1)
    return -jnp.sum(logp[jnp.arange(y.shape[0]), y])


# ----------------------------------------------------------------------------
def make_params(key, num_locs, loc_dim, num_times, time_dim, hidden, latent):
    din = loc_dim + time_dim
    ks = jax.random.split(key, 24)
    s = 0.1
    return {
        "loc_emb":  jax.random.normal(ks[0], (num_locs, loc_dim), jnp.float32) * s,
        "time_emb": jax.random.normal(ks[1], (num_times, time_dim), jnp.float32) * s,
        "q_wih": jax.random.normal(ks[2], (din, 3 * hidden), jnp.float32) * s,
        "q_whh": jax.random.normal(ks[3], (hidden, 3 * hidden), jnp.float32) * s,
        "q_bih": jax.random.normal(ks[4], (1, 3 * hidden), jnp.float32) * s,
        "q_bhh": jax.random.normal(ks[5], (1, 3 * hidden), jnp.float32) * s,
        "d_wih": jax.random.normal(ks[6], (din, 3 * hidden), jnp.float32) * s,
        "d_whh": jax.random.normal(ks[7], (hidden, 3 * hidden), jnp.float32) * s,
        "d_bih": jax.random.normal(ks[8], (1, 3 * hidden), jnp.float32) * s,
        "d_bhh": jax.random.normal(ks[9], (1, 3 * hidden), jnp.float32) * s,
        "wqk": jax.random.normal(ks[10], (hidden, latent), jnp.float32) * s,
        "bqk": jax.random.normal(ks[11], (1, latent), jnp.float32) * s,
        "wqv": jax.random.normal(ks[12], (hidden, latent), jnp.float32) * s,
        "bqv": jax.random.normal(ks[13], (1, latent), jnp.float32) * s,
        "wdk": jax.random.normal(ks[14], (hidden, latent), jnp.float32) * s,
        "bdk": jax.random.normal(ks[15], (1, latent), jnp.float32) * s,
        "wdv": jax.random.normal(ks[16], (hidden, latent), jnp.float32) * s,
        "bdv": jax.random.normal(ks[17], (1, latent), jnp.float32) * s,
        # out_layer weight (2L, C) split into the qry-val half and doc-val half
        "wout_q": jax.random.normal(ks[18], (latent, num_locs), jnp.float32) * s,
        "wout_d": jax.random.normal(ks[19], (latent, num_locs), jnp.float32) * s,
        "bout":   jax.random.normal(ks[20], (1, num_locs), jnp.float32) * s,
    }


if __name__ == "__main__":
    num_locs, num_times = 128, 24
    loc_dim, time_dim = 8, 8
    hidden, latent = 32, 16
    B, Tq, Td = 8, 8, 8

    key = jax.random.PRNGKey(0)
    kp, k1, k2, k3, k4, ky = jax.random.split(key, 6)
    params = make_params(kp, num_locs, loc_dim, num_times, time_dim,
                         hidden, latent)
    packed = pack_params(params)   # one-time, outside the jitted forward

    x_loc_qry = jax.random.randint(k1, (B, Tq), 0, num_locs, jnp.int32)
    x_t_qry   = jax.random.randint(k2, (B, Tq), 0, num_times, jnp.int32)
    x_loc_doc = jax.random.randint(k3, (B, Td), 0, num_locs, jnp.int32)
    x_t_doc   = jax.random.randint(k4, (B, Td), 0, num_times, jnp.int32)
    y         = jax.random.randint(ky, (B,), 0, num_locs, jnp.int32)

    loss = local_predictor_forward(packed, x_loc_qry, x_t_qry,
                                   x_loc_doc, x_t_doc, y)
    loss = jax.block_until_ready(loss)

    ref = _reference_forward(params, x_loc_qry, x_t_qry, x_loc_doc, x_t_doc, y)
    # bf16 MXU operands (f32 accumulate) + approx reciprocal -> slightly looser
    # tolerance than pure-f32; measured error is ~1e-3 on a ~39 loss.
    assert jnp.allclose(loss, ref, rtol=2e-3, atol=2e-3), (loss, ref)

    print("KERNEL_OK")
</pallas_src>

<mosaic_0001>
module attributes {stable_mosaic.version = 11 : i64} {
  func.func @fused_kernel(%arg0: memref<64x32xbf16, #tpu.memory_space<vmem>>, %arg1: memref<96x192xbf16, #tpu.memory_space<vmem>>, %arg2: memref<1x256xf32, #tpu.memory_space<vmem>>, %arg3: memref<32x64xbf16, #tpu.memory_space<vmem>>, %arg4: memref<32x128xbf16, #tpu.memory_space<vmem>>, %arg5: memref<1x192xf32, #tpu.memory_space<vmem>>, %arg6: memref<8x1xi32, #tpu.memory_space<vmem>>, %arg7: memref<1x1xf32, #tpu.memory_space<smem>>) attributes {dimension_semantics = [], scalar_prefetch = 0 : i64, scratch_operands = 0 : i64, tpu.core_type = #tpu.core_type<tc>} {
    %c0 = arith.constant 0 : index
    %c0_0 = arith.constant 0 : index
    %0 = vector.load %arg1[%c0, %c0_0] : memref<96x192xbf16, #tpu.memory_space<vmem>>, vector<32x192xbf16>
    %c32 = arith.constant 32 : index
    %c0_1 = arith.constant 0 : index
    %1 = vector.load %arg1[%c32, %c0_1] : memref<96x192xbf16, #tpu.memory_space<vmem>>, vector<64x192xbf16>
    %c0_2 = arith.constant 0 : index
    %c0_3 = arith.constant 0 : index
    %2 = vector.load %arg2[%c0_2, %c0_3] : memref<1x256xf32, #tpu.memory_space<vmem>>, vector<1x192xf32>
    %c0_4 = arith.constant 0 : index
    %c192 = arith.constant 192 : index
    %3 = vector.load %arg2[%c0_4, %c192] : memref<1x256xf32, #tpu.memory_space<vmem>>, vector<1x64xf32>
    %4 = vector.shape_cast %3 : vector<1x64xf32> to vector<1x64xf32>
    %5 = vector.broadcast %4 : vector<1x64xf32> to vector<8x64xf32>
    %c0_5 = arith.constant 0 : index
    %c0_6 = arith.constant 0 : index
    %6 = vector.load %arg0[%c0_5, %c0_6] : memref<64x32xbf16, #tpu.memory_space<vmem>>, vector<64x32xbf16>
    %cst = arith.constant dense<0.000000e+00> : vector<64x192xf32>
    %7 = tpu.matmul %6, %0, %cst {dimension_numbers = #tpu.dot_dimension_numbers<[1], [0], [0], [1], [0, 0, 1, 1], [], []>} : vector<64x32xbf16>, vector<32x192xbf16>, vector<64x192xf32> -> vector<64x192xf32>
    %8 = vector.broadcast %2 : vector<1x192xf32> to vector<64x192xf32>
    %9 = arith.addf %7, %8 : vector<64x192xf32>
    %cst_7 = arith.constant 0.000000e+00 : f32
    %10 = vector.broadcast %cst_7 : f32 to vector<8x64xf32>
    %11 = vector.extract_strided_slice %9 {offsets = [0, 0], sizes = [8, 192], strides = [1, 1]} : vector<64x192xf32> to vector<8x192xf32>
    %12 = arith.truncf %10 : vector<8x64xf32> to vector<8x64xbf16>
    %cst_8 = arith.constant dense<0.000000e+00> : vector<8x192xf32>
    %13 = tpu.matmul %12, %1, %cst_8 {dimension_numbers = #tpu.dot_dimension_numbers<[1], [0], [0], [1], [0, 0, 1, 1], [], []>} : vector<8x64xbf16>, vector<64x192xbf16>, vector<8x192xf32> -> vector<8x192xf32>
    %14 = vector.extract_strided_slice %11 {offsets = [0, 0], sizes = [8, 64], strides = [1, 1]} : vector<8x192xf32> to vector<8x64xf32>
    %15 = vector.extract_strided_slice %13 {offsets = [0, 0], sizes = [8, 64], strides = [1, 1]} : vector<8x192xf32> to vector<8x64xf32>
    %16 = arith.addf %14, %15 : vector<8x64xf32>
    %17 = arith.negf %16 : vector<8x64xf32>
    %18 = math.exp %17 : vector<8x64xf32>
    %cst_9 = arith.constant 1.000000e+00 : f32
    %19 = vector.broadcast %cst_9 : f32 to vector<8x64xf32>
    %20 = arith.addf %19, %18 : vector<8x64xf32>
    %21 = arith.divf %19, %20 : vector<8x64xf32>
    %22 = vector.extract_strided_slice %11 {offsets = [0, 64], sizes = [8, 64], strides = [1, 1]} : vector<8x192xf32> to vector<8x64xf32>
    %23 = vector.extract_strided_slice %13 {offsets = [0, 64], sizes = [8, 64], strides = [1, 1]} : vector<8x192xf32> to vector<8x64xf32>
    %24 = arith.addf %22, %23 : vector<8x64xf32>
    %25 = arith.negf %24 : vector<8x64xf32>
    %26 = math.exp %25 : vector<8x64xf32>
    %cst_10 = arith.constant 1.000000e+00 : f32
    %27 = vector.broadcast %cst_10 : f32 to vector<8x64xf32>
    %28 = arith.addf %27, %26 : vector<8x64xf32>
    %29 = arith.divf %27, %28 : vector<8x64xf32>
    %30 = vector.extract_strided_slice %11 {offsets = [0, 128], sizes = [8, 64], strides = [1, 1]} : vector<8x192xf32> to vector<8x64xf32>
    %31 = vector.extract_strided_slice %13 {offsets = [0, 128], sizes = [8, 64], strides = [1, 1]} : vector<8x192xf32> to vector<8x64xf32>
    %32 = arith.addf %31, %5 : vector<8x64xf32>
    %33 = arith.mulf %21, %32 : vector<8x64xf32>
    %34 = arith.addf %30, %33 : vector<8x64xf32>
    %35 = math.tanh %34 : vector<8x64xf32>
    %cst_11 = arith.constant 1.000000e+00 : f32
    %36 = vector.broadcast %cst_11 : f32 to vector<8x64xf32>
    %37 = arith.subf %36, %29 : vector<8x64xf32>
    %38 = arith.mulf %37, %35 : vector<8x64xf32>
    %39 = arith.mulf %29, %10 : vector<8x64xf32>
    %40 = arith.addf %38, %39 : vector<8x64xf32>
    %41 = vector.extract_strided_slice %9 {offsets = [8, 0], sizes = [8, 192], strides = [1, 1]} : vector<64x192xf32> to vector<8x192xf32>
    %42 = arith.truncf %40 : vector<8x64xf32> to vector<8x64xbf16>
    %cst_12 = arith.constant dense<0.000000e+00> : vector<8x192xf32>
    %43 = tpu.matmul %42, %1, %cst_12 {dimension_numbers = #tpu.dot_dimension_numbers<[1], [0], [0], [1], [0, 0, 1, 1], [], []>} : vector<8x64xbf16>, vector<64x192xbf16>, vector<8x192xf32> -> vector<8x192xf32>
    %44 = vector.extract_strided_slice %41 {offsets = [0, 0], sizes = [8, 64], strides = [1, 1]} : vector<8x192xf32> to vector<8x64xf32>
    %45 = vector.extract_strided_slice %43 {offsets = [0, 0], sizes = [8, 64], strides = [1, 1]} : vector<8x192xf32> to vector<8x64xf32>
    %46 = arith.addf %44, %45 : vector<8x64xf32>
    %47 = arith.negf %46 : vector<8x64xf32>
    %48 = math.exp %47 : vector<8x64xf32>
    %cst_13 = arith.constant 1.000000e+00 : f32
    %49 = vector.broadcast %cst_13 : f32 to vector<8x64xf32>
    %50 = arith.addf %49, %48 : vector<8x64xf32>
    %51 = arith.divf %49, %50 : vector<8x64xf32>
    %52 = vector.extract_strided_slice %41 {offsets = [0, 64], sizes = [8, 64], strides = [1, 1]} : vector<8x192xf32> to vector<8x64xf32>
    %53 = vector.extract_strided_slice %43 {offsets = [0, 64], sizes = [8, 64], strides = [1, 1]} : vector<8x192xf32> to vector<8x64xf32>
    %54 = arith.addf %52, %53 : vector<8x64xf32>
    %55 = arith.negf %54 : vector<8x64xf32>
    %56 = math.exp %55 : vector<8x64xf32>
    %cst_14 = arith.constant 1.000000e+00 : f32
    %57 = vector.broadcast %cst_14 : f32 to vector<8x64xf32>
    %58 = arith.addf %57, %56 : vector<8x64xf32>
    %59 = arith.divf %57, %58 : vector<8x64xf32>
    %60 = vector.extract_strided_slice %41 {offsets = [0, 128], sizes = [8, 64], strides = [1, 1]} : vector<8x192xf32> to vector<8x64xf32>
    %61 = vector.extract_strided_slice %43 {offsets = [0, 128], sizes = [8, 64], strides = [1, 1]} : vector<8x192xf32> to vector<8x64xf32>
    %62 = arith.addf %61, %5 : vector<8x64xf32>
    %63 = arith.mulf %51, %62 : vector<8x64xf32>
    %64 = arith.addf %60, %63 : vector<8x64xf32>
    %65 = math.tanh %64 : vector<8x64xf32>
    %cst_15 = arith.constant 1.000000e+00 : f32
    %66 = vector.broadcast %cst_15 : f32 to vector<8x64xf32>
    %67 = arith.subf %66, %59 : vector<8x64xf32>
    %68 = arith.mulf %67, %65 : vector<8x64xf32>
    %69 = arith.mulf %59, %40 : vector<8x64xf32>
    %70 = arith.addf %68, %69 : vector<8x64xf32>
    %71 = vector.extract_strided_slice %9 {offsets = [16, 0], sizes = [8, 192], strides = [1, 1]} : vector<64x192xf32> to vector<8x192xf32>
    %72 = arith.truncf %70 : vector<8x64xf32> to vector<8x64xbf16>
    %cst_16 = arith.constant dense<0.000000e+00> : vector<8x192xf32>
    %73 = tpu.matmul %72, %1, %cst_16 {dimension_numbers = #tpu.dot_dimension_numbers<[1], [0], [0], [1], [0, 0, 1, 1], [], []>} : vector<8x64xbf16>, vector<64x192xbf16>, vector<8x192xf32> -> vector<8x192xf32>
    %74 = vector.extract_strided_slice %71 {offsets = [0, 0], sizes = [8, 64], strides = [1, 1]} : vector<8x192xf32> to vector<8x64xf32>
    %75 = vector.extract_strided_slice %73 {offsets = [0, 0], sizes = [8, 64], strides = [1, 1]} : vector<8x192xf32> to vector<8x64xf32>
    %76 = arith.addf %74, %75 : vector<8x64xf32>
    %77 = arith.negf %76 : vector<8x64xf32>
    %78 = math.exp %77 : vector<8x64xf32>
    %cst_17 = arith.constant 1.000000e+00 : f32
    %79 = vector.broadcast %cst_17 : f32 to vector<8x64xf32>
    %80 = arith.addf %79, %78 : vector<8x64xf32>
    %81 = arith.divf %79, %80 : vector<8x64xf32>
    %82 = vector.extract_strided_slice %71 {offsets = [0, 64], sizes = [8, 64], strides = [1, 1]} : vector<8x192xf32> to vector<8x64xf32>
    %83 = vector.extract_strided_slice %73 {offsets = [0, 64], sizes = [8, 64], strides = [1, 1]} : vector<8x192xf32> to vector<8x64xf32>
    %84 = arith.addf %82, %83 : vector<8x64xf32>
    %85 = arith.negf %84 : vector<8x64xf32>
    %86 = math.exp %85 : vector<8x64xf32>
    %cst_18 = arith.constant 1.000000e+00 : f32
    %87 = vector.broadcast %cst_18 : f32 to vector<8x64xf32>
    %88 = arith.addf %87, %86 : vector<8x64xf32>
    %89 = arith.divf %87, %88 : vector<8x64xf32>
    %90 = vector.extract_strided_slice %71 {offsets = [0, 128], sizes = [8, 64], strides = [1, 1]} : vector<8x192xf32> to vector<8x64xf32>
    %91 = vector.extract_strided_slice %73 {offsets = [0, 128], sizes = [8, 64], strides = [1, 1]} : vector<8x192xf32> to vector<8x64xf32>
    %92 = arith.addf %91, %5 : vector<8x64xf32>
    %93 = arith.mulf %81, %92 : vector<8x64xf32>
    %94 = arith.addf %90, %93 : vector<8x64xf32>
    %95 = math.tanh %94 : vector<8x64xf32>
    %cst_19 = arith.constant 1.000000e+00 : f32
    %96 = vector.broadcast %cst_19 : f32 to vector<8x64xf32>
    %97 = arith.subf %96, %89 : vector<8x64xf32>
    %98 = arith.mulf %97, %95 : vector<8x64xf32>
    %99 = arith.mulf %89, %70 : vector<8x64xf32>
    %100 = arith.addf %98, %99 : vector<8x64xf32>
    %101 = vector.extract_strided_slice %9 {offsets = [24, 0], sizes = [8, 192], strides = [1, 1]} : vector<64x192xf32> to vector<8x192xf32>
    %102 = arith.truncf %100 : vector<8x64xf32> to vector<8x64xbf16>
    %cst_20 = arith.constant dense<0.000000e+00> : vector<8x192xf32>
    %103 = tpu.matmul %102, %1, %cst_20 {dimension_numbers = #tpu.dot_dimension_numbers<[1], [0], [0], [1], [0, 0, 1, 1], [], []>} : vector<8x64xbf16>, vector<64x192xbf16>, vector<8x192xf32> -> vector<8x192xf32>
    %104 = vector.extract_strided_slice %101 {offsets = [0, 0], sizes = [8, 64], strides = [1, 1]} : vector<8x192xf32> to vector<8x64xf32>
    %105 = vector.extract_strided_slice %103 {offsets = [0, 0], sizes = [8, 64], strides = [1, 1]} : vector<8x192xf32> to vector<8x64xf32>
    %106 = arith.addf %104, %105 : vector<8x64xf32>
    %107 = arith.negf %106 : vector<8x64xf32>
    %108 = math.exp %107 : vector<8x64xf32>
    %cst_21 = arith.constant 1.000000e+00 : f32
    %109 = vector.broadcast %cst_21 : f32 to vector<8x64xf32>
    %110 = arith.addf %109, %108 : vector<8x64xf32>
    %111 = arith.divf %109, %110 : vector<8x64xf32>
    %112 = vector.extract_strided_slice %101 {offsets = [0, 64], sizes = [8, 64], strides = [1, 1]} : vector<8x192xf32> to vector<8x64xf32>
    %113 = vector.extract_strided_slice %103 {offsets = [0, 64], sizes = [8, 64], strides = [1, 1]} : vector<8x192xf32> to vector<8x64xf32>
    %114 = arith.addf %112, %113 : vector<8x64xf32>
    %115 = arith.negf %114 : vector<8x64xf32>
    %116 = math.exp %115 : vector<8x64xf32>
    %cst_22 = arith.constant 1.000000e+00 : f32
    %117 = vector.broadcast %cst_22 : f32 to vector<8x64xf32>
    %118 = arith.addf %117, %116 : vector<8x64xf32>
    %119 = arith.divf %117, %118 : vector<8x64xf32>
    %120 = vector.extract_strided_slice %101 {offsets = [0, 128], sizes = [8, 64], strides = [1, 1]} : vector<8x192xf32> to vector<8x64xf32>
    %121 = vector.extract_strided_slice %103 {offsets = [0, 128], sizes = [8, 64], strides = [1, 1]} : vector<8x192xf32> to vector<8x64xf32>
    %122 = arith.addf %121, %5 : vector<8x64xf32>
    %123 = arith.mulf %111, %122 : vector<8x64xf32>
    %124 = arith.addf %120, %123 : vector<8x64xf32>
    %125 = math.tanh %124 : vector<8x64xf32>
    %cst_23 = arith.constant 1.000000e+00 : f32
    %126 = vector.broadcast %cst_23 : f32 to vector<8x64xf32>
    %127 = arith.subf %126, %119 : vector<8x64xf32>
    %128 = arith.mulf %127, %125 : vector<8x64xf32>
    %129 = arith.mulf %119, %100 : vector<8x64xf32>
    %130 = arith.addf %128, %129 : vector<8x64xf32>
    %131 = vector.extract_strided_slice %130 {offsets = [0, 32], sizes = [8, 32], strides = [1, 1]} : vector<8x64xf32> to vector<8x32xf32>
    %132 = vector.extract_strided_slice %9 {offsets = [32, 0], sizes = [8, 192], strides = [1, 1]} : vector<64x192xf32> to vector<8x192xf32>
    %133 = arith.truncf %130 : vector<8x64xf32> to vector<8x64xbf16>
    %cst_24 = arith.constant dense<0.000000e+00> : vector<8x192xf32>
    %134 = tpu.matmul %133, %1, %cst_24 {dimension_numbers = #tpu.dot_dimension_numbers<[1], [0], [0], [1], [0, 0, 1, 1], [], []>} : vector<8x64xbf16>, vector<64x192xbf16>, vector<8x192xf32> -> vector<8x192xf32>
    %135 = vector.extract_strided_slice %132 {offsets = [0, 0], sizes = [8, 64], strides = [1, 1]} : vector<8x192xf32> to vector<8x64xf32>
    %136 = vector.extract_strided_slice %134 {offsets = [0, 0], sizes = [8, 64], strides = [1, 1]} : vector<8x192xf32> to vector<8x64xf32>
    %137 = arith.addf %135, %136 : vector<8x64xf32>
    %138 = arith.negf %137 : vector<8x64xf32>
    %139 = math.exp %138 : vector<8x64xf32>
    %cst_25 = arith.constant 1.000000e+00 : f32
    %140 = vector.broadcast %cst_25 : f32 to vector<8x64xf32>
    %141 = arith.addf %140, %139 : vector<8x64xf32>
    %142 = arith.divf %140, %141 : vector<8x64xf32>
    %143 = vector.extract_strided_slice %132 {offsets = [0, 64], sizes = [8, 64], strides = [1, 1]} : vector<8x192xf32> to vector<8x64xf32>
    %144 = vector.extract_strided_slice %134 {offsets = [0, 64], sizes = [8, 64], strides = [1, 1]} : vector<8x192xf32> to vector<8x64xf32>
    %145 = arith.addf %143, %144 : vector<8x64xf32>
    %146 = arith.negf %145 : vector<8x64xf32>
    %147 = math.exp %146 : vector<8x64xf32>
    %cst_26 = arith.constant 1.000000e+00 : f32
    %148 = vector.broadcast %cst_26 : f32 to vector<8x64xf32>
    %149 = arith.addf %148, %147 : vector<8x64xf32>
    %150 = arith.divf %148, %149 : vector<8x64xf32>
    %151 = vector.extract_strided_slice %132 {offsets = [0, 128], sizes = [8, 64], strides = [1, 1]} : vector<8x192xf32> to vector<8x64xf32>
    %152 = vector.extract_strided_slice %134 {offsets = [0, 128], sizes = [8, 64], strides = [1, 1]} : vector<8x192xf32> to vector<8x64xf32>
    %153 = arith.addf %152, %5 : vector<8x64xf32>
    %154 = arith.mulf %142, %153 : vector<8x64xf32>
    %155 = arith.addf %151, %154 : vector<8x64xf32>
    %156 = math.tanh %155 : vector<8x64xf32>
    %cst_27 = arith.constant 1.000000e+00 : f32
    %157 = vector.broadcast %cst_27 : f32 to vector<8x64xf32>
    %158 = arith.subf %157, %150 : vector<8x64xf32>
    %159 = arith.mulf %158, %156 : vector<8x64xf32>
    %160 = arith.mulf %150, %130 : vector<8x64xf32>
    %161 = arith.addf %159, %160 : vector<8x64xf32>
    %162 = vector.extract_strided_slice %9 {offsets = [40, 0], sizes = [8, 192], strides = [1, 1]} : vector<64x192xf32> to vector<8x192xf32>
    %163 = arith.truncf %161 : vector<8x64xf32> to vector<8x64xbf16>
    %cst_28 = arith.constant dense<0.000000e+00> : vector<8x192xf32>
    %164 = tpu.matmul %163, %1, %cst_28 {dimension_numbers = #tpu.dot_dimension_numbers<[1], [0], [0], [1], [0, 0, 1, 1], [], []>} : vector<8x64xbf16>, vector<64x192xbf16>, vector<8x192xf32> -> vector<8x192xf32>
    %165 = vector.extract_strided_slice %162 {offsets = [0, 0], sizes = [8, 64], strides = [1, 1]} : vector<8x192xf32> to vector<8x64xf32>
    %166 = vector.extract_strided_slice %164 {offsets = [0, 0], sizes = [8, 64], strides = [1, 1]} : vector<8x192xf32> to vector<8x64xf32>
    %167 = arith.addf %165, %166 : vector<8x64xf32>
    %168 = arith.negf %167 : vector<8x64xf32>
    %169 = math.exp %168 : vector<8x64xf32>
    %cst_29 = arith.constant 1.000000e+00 : f32
    %170 = vector.broadcast %cst_29 : f32 to vector<8x64xf32>
    %171 = arith.addf %170, %169 : vector<8x64xf32>
    %172 = arith.divf %170, %171 : vector<8x64xf32>
    %173 = vector.extract_strided_slice %162 {offsets = [0, 64], sizes = [8, 64], strides = [1, 1]} : vector<8x192xf32> to vector<8x64xf32>
    %174 = vector.extract_strided_slice %164 {offsets = [0, 64], sizes = [8, 64], strides = [1, 1]} : vector<8x192xf32> to vector<8x64xf32>
    %175 = arith.addf %173, %174 : vector<8x64xf32>
    %176 = arith.negf %175 : vector<8x64xf32>
    %177 = math.exp %176 : vector<8x64xf32>
    %cst_30 = arith.constant 1.000000e+00 : f32
    %178 = vector.broadcast %cst_30 : f32 to vector<8x64xf32>
    %179 = arith.addf %178, %177 : vector<8x64xf32>
    %180 = arith.divf %178, %179 : vector<8x64xf32>
    %181 = vector.extract_strided_slice %162 {offsets = [0, 128], sizes = [8, 64], strides = [1, 1]} : vector<8x192xf32> to vector<8x64xf32>
    %182 = vector.extract_strided_slice %164 {offsets = [0, 128], sizes = [8, 64], strides = [1, 1]} : vector<8x192xf32> to vector<8x64xf32>
    %183 = arith.addf %182, %5 : vector<8x64xf32>
    %184 = arith.mulf %172, %183 : vector<8x64xf32>
    %185 = arith.addf %181, %184 : vector<8x64xf32>
    %186 = math.tanh %185 : vector<8x64xf32>
    %cst_31 = arith.constant 1.000000e+00 : f32
    %187 = vector.broadcast %cst_31 : f32 to vector<8x64xf32>
    %188 = arith.subf %187, %180 : vector<8x64xf32>
    %189 = arith.mulf %188, %186 : vector<8x64xf32>
    %190 = arith.mulf %180, %161 : vector<8x64xf32>
    %191 = arith.addf %189, %190 : vector<8x64xf32>
    %192 = vector.extract_strided_slice %9 {offsets = [48, 0], sizes = [8, 192], strides = [1, 1]} : vector<64x192xf32> to vector<8x192xf32>
    %193 = arith.truncf %191 : vector<8x64xf32> to vector<8x64xbf16>
    %cst_32 = arith.constant dense<0.000000e+00> : vector<8x192xf32>
    %194 = tpu.matmul %193, %1, %cst_32 {dimension_numbers = #tpu.dot_dimension_numbers<[1], [0], [0], [1], [0, 0, 1, 1], [], []>} : vector<8x64xbf16>, vector<64x192xbf16>, vector<8x192xf32> -> vector<8x192xf32>
    %195 = vector.extract_strided_slice %192 {offsets = [0, 0], sizes = [8, 64], strides = [1, 1]} : vector<8x192xf32> to vector<8x64xf32>
    %196 = vector.extract_strided_slice %194 {offsets = [0, 0], sizes = [8, 64], strides = [1, 1]} : vector<8x192xf32> to vector<8x64xf32>
    %197 = arith.addf %195, %196 : vector<8x64xf32>
    %198 = arith.negf %197 : vector<8x64xf32>
    %199 = math.exp %198 : vector<8x64xf32>
    %cst_33 = arith.constant 1.000000e+00 : f32
    %200 = vector.broadcast %cst_33 : f32 to vector<8x64xf32>
    %201 = arith.addf %200, %199 : vector<8x64xf32>
    %202 = arith.divf %200, %201 : vector<8x64xf32>
    %203 = vector.extract_strided_slice %192 {offsets = [0, 64], sizes = [8, 64], strides = [1, 1]} : vector<8x192xf32> to vector<8x64xf32>
    %204 = vector.extract_strided_slice %194 {offsets = [0, 64], sizes = [8, 64], strides = [1, 1]} : vector<8x192xf32> to vector<8x64xf32>
    %205 = arith.addf %203, %204 : vector<8x64xf32>
    %206 = arith.negf %205 : vector<8x64xf32>
    %207 = math.exp %206 : vector<8x64xf32>
    %cst_34 = arith.constant 1.000000e+00 : f32
    %208 = vector.broadcast %cst_34 : f32 to vector<8x64xf32>
    %209 = arith.addf %208, %207 : vector<8x64xf32>
    %210 = arith.divf %208, %209 : vector<8x64xf32>
    %211 = vector.extract_strided_slice %192 {offsets = [0, 128], sizes = [8, 64], strides = [1, 1]} : vector<8x192xf32> to vector<8x64xf32>
    %212 = vector.extract_strided_slice %194 {offsets = [0, 128], sizes = [8, 64], strides = [1, 1]} : vector<8x192xf32> to vector<8x64xf32>
    %213 = arith.addf %212, %5 : vector<8x64xf32>
    %214 = arith.mulf %202, %213 : vector<8x64xf32>
    %215 = arith.addf %211, %214 : vector<8x64xf32>
    %216 = math.tanh %215 : vector<8x64xf32>
    %cst_35 = arith.constant 1.000000e+00 : f32
    %217 = vector.broadcast %cst_35 : f32 to vector<8x64xf32>
    %218 = arith.subf %217, %210 : vector<8x64xf32>
    %219 = arith.mulf %218, %216 : vector<8x64xf32>
    %220 = arith.mulf %210, %191 : vector<8x64xf32>
    %221 = arith.addf %219, %220 : vector<8x64xf32>
    %222 = vector.extract_strided_slice %9 {offsets = [56, 0], sizes = [8, 192], strides = [1, 1]} : vector<64x192xf32> to vector<8x192xf32>
    %223 = arith.truncf %221 : vector<8x64xf32> to vector<8x64xbf16>
    %cst_36 = arith.constant dense<0.000000e+00> : vector<8x192xf32>
    %224 = tpu.matmul %223, %1, %cst_36 {dimension_numbers = #tpu.dot_dimension_numbers<[1], [0], [0], [1], [0, 0, 1, 1], [], []>} : vector<8x64xbf16>, vector<64x192xbf16>, vector<8x192xf32> -> vector<8x192xf32>
    %225 = vector.extract_strided_slice %222 {offsets = [0, 0], sizes = [8, 64], strides = [1, 1]} : vector<8x192xf32> to vector<8x64xf32>
    %226 = vector.extract_strided_slice %224 {offsets = [0, 0], sizes = [8, 64], strides = [1, 1]} : vector<8x192xf32> to vector<8x64xf32>
    %227 = arith.addf %225, %226 : vector<8x64xf32>
    %228 = arith.negf %227 : vector<8x64xf32>
    %229 = math.exp %228 : vector<8x64xf32>
    %cst_37 = arith.constant 1.000000e+00 : f32
    %230 = vector.broadcast %cst_37 : f32 to vector<8x64xf32>
    %231 = arith.addf %230, %229 : vector<8x64xf32>
    %232 = arith.divf %230, %231 : vector<8x64xf32>
    %233 = vector.extract_strided_slice %222 {offsets = [0, 64], sizes = [8, 64], strides = [1, 1]} : vector<8x192xf32> to vector<8x64xf32>
    %234 = vector.extract_strided_slice %224 {offsets = [0, 64], sizes = [8, 64], strides = [1, 1]} : vector<8x192xf32> to vector<8x64xf32>
    %235 = arith.addf %233, %234 : vector<8x64xf32>
    %236 = arith.negf %235 : vector<8x64xf32>
    %237 = math.exp %236 : vector<8x64xf32>
    %cst_38 = arith.constant 1.000000e+00 : f32
    %238 = vector.broadcast %cst_38 : f32 to vector<8x64xf32>
    %239 = arith.addf %238, %237 : vector<8x64xf32>
    %240 = arith.divf %238, %239 : vector<8x64xf32>
    %241 = vector.extract_strided_slice %222 {offsets = [0, 128], sizes = [8, 64], strides = [1, 1]} : vector<8x192xf32> to vector<8x64xf32>
    %242 = vector.extract_strided_slice %224 {offsets = [0, 128], sizes = [8, 64], strides = [1, 1]} : vector<8x192xf32> to vector<8x64xf32>
    %243 = arith.addf %242, %5 : vector<8x64xf32>
    %244 = arith.mulf %232, %243 : vector<8x64xf32>
    %245 = arith.addf %241, %244 : vector<8x64xf32>
    %246 = math.tanh %245 : vector<8x64xf32>
    %cst_39 = arith.constant 1.000000e+00 : f32
    %247 = vector.broadcast %cst_39 : f32 to vector<8x64xf32>
    %248 = arith.subf %247, %240 : vector<8x64xf32>
    %249 = arith.mulf %248, %246 : vector<8x64xf32>
    %250 = arith.mulf %240, %221 : vector<8x64xf32>
    %251 = arith.addf %249, %250 : vector<8x64xf32>
    %252 = vector.extract_strided_slice %251 {offsets = [0, 0], sizes = [8, 32], strides = [1, 1]} : vector<8x64xf32> to vector<8x32xf32>
    %253 = vector.extract_strided_slice %251 {offsets = [0, 32], sizes = [8, 32], strides = [1, 1]} : vector<8x64xf32> to vector<8x32xf32>
    %254 = tpu.concatenate %252, %131, %253 in 0 : vector<8x32xf32>, vector<8x32xf32>, vector<8x32xf32> -> vector<24x32xf32>
    %255 = arith.truncf %254 : vector<24x32xf32> to vector<24x32xbf16>
    %c0_40 = arith.constant 0 : index
    %c0_41 = arith.constant 0 : index
    %256 = vector.load %arg3[%c0_40, %c0_41] : memref<32x64xbf16, #tpu.memory_space<vmem>>, vector<32x64xbf16>
    %cst_42 = arith.constant dense<0.000000e+00> : vector<24x64xf32>
    %257 = tpu.matmul %255, %256, %cst_42 {dimension_numbers = #tpu.dot_dimension_numbers<[1], [0], [0], [1], [0, 0, 1, 1], [], []>} : vector<24x32xbf16>, vector<32x64xbf16>, vector<24x64xf32> -> vector<24x64xf32>
    %c0_43 = arith.constant 0 : index
    %c0_44 = arith.constant 0 : index
    %258 = vector.load %arg5[%c0_43, %c0_44] : memref<1x192xf32, #tpu.memory_space<vmem>>, vector<1x64xf32>
    %259 = vector.broadcast %258 : vector<1x64xf32> to vector<24x64xf32>
    %260 = arith.addf %257, %259 : vector<24x64xf32>
    %cst_45 = arith.constant 0.000000e+00 : f32
    %261 = vector.broadcast %cst_45 : f32 to vector<24x64xf32>
    %262 = arith.maximumf %260, %261 : vector<24x64xf32>
    %263 = vector.extract_strided_slice %262 {offsets = [0, 0], sizes = [8, 16], strides = [1, 1]} : vector<24x64xf32> to vector<8x16xf32>
    %264 = vector.extract_strided_slice %262 {offsets = [0, 16], sizes = [8, 16], strides = [1, 1]} : vector<24x64xf32> to vector<8x16xf32>
    %265 = vector.extract_strided_slice %262 {offsets = [8, 32], sizes = [8, 16], strides = [1, 1]} : vector<24x64xf32> to vector<8x16xf32>
    %266 = vector.extract_strided_slice %262 {offsets = [16, 48], sizes = [8, 16], strides = [1, 1]} : vector<24x64xf32> to vector<8x16xf32>
    %267 = arith.truncf %263 : vector<8x16xf32> to vector<8x16xbf16>
    %268 = arith.truncf %265 : vector<8x16xf32> to vector<8x16xbf16>
    %cst_46 = arith.constant dense<0.000000e+00> : vector<8x8xf32>
    %269 = tpu.matmul %267, %268, %cst_46 {dimension_numbers = #tpu.dot_dimension_numbers<[1], [1], [0], [0], [0, 0, 1, 0], [], []>} : vector<8x16xbf16>, vector<8x16xbf16>, vector<8x8xf32> -> vector<8x8xf32>
    %cst_47 = arith.constant dense<0xFF800000> : vector<8xf32>
    %270 = vector.multi_reduction <maximumf>, %269, %cst_47 [1] : vector<8x8xf32> to vector<8xf32>
    %271 = vector.shape_cast %270 : vector<8xf32> to vector<8x1xf32>
    %272 = vector.broadcast %271 : vector<8x1xf32> to vector<8x8xf32>
    %273 = arith.subf %269, %272 : vector<8x8xf32>
    %274 = math.exp %273 : vector<8x8xf32>
    %cst_48 = arith.constant dense<0.000000e+00> : vector<8xf32>
    %275 = vector.multi_reduction <add>, %274, %cst_48 [1] : vector<8x8xf32> to vector<8xf32>
    %276 = vector.shape_cast %275 : vector<8xf32> to vector<8x1xf32>
    %277 = tpu.reciprocal %276 {approx = true} : vector<8x1xf32> -> vector<8x1xf32>
    %278 = vector.broadcast %277 : vector<8x1xf32> to vector<8x8xf32>
    %279 = arith.mulf %274, %278 : vector<8x8xf32>
    %280 = arith.truncf %279 : vector<8x8xf32> to vector<8x8xbf16>
    %281 = arith.truncf %266 : vector<8x16xf32> to vector<8x16xbf16>
    %cst_49 = arith.constant dense<0.000000e+00> : vector<8x16xf32>
    %282 = tpu.matmul %280, %281, %cst_49 {dimension_numbers = #tpu.dot_dimension_numbers<[1], [0], [0], [1], [0, 0, 1, 1], [], []>} : vector<8x8xbf16>, vector<8x16xbf16>, vector<8x16xf32> -> vector<8x16xf32>
    %283 = tpu.concatenate %264, %282 in 1 : vector<8x16xf32>, vector<8x16xf32> -> vector<8x32xf32>
    %284 = arith.truncf %283 : vector<8x32xf32> to vector<8x32xbf16>
    %c0_50 = arith.constant 0 : index
    %c0_51 = arith.constant 0 : index
    %285 = vector.load %arg4[%c0_50, %c0_51] : memref<32x128xbf16, #tpu.memory_space<vmem>>, vector<32x128xbf16>
    %cst_52 = arith.constant dense<0.000000e+00> : vector<8x128xf32>
    %286 = tpu.matmul %284, %285, %cst_52 {dimension_numbers = #tpu.dot_dimension_numbers<[1], [0], [0], [1], [0, 0, 1, 1], [], []>} : vector<8x32xbf16>, vector<32x128xbf16>, vector<8x128xf32> -> vector<8x128xf32>
    %c0_53 = arith.constant 0 : index
    %c64 = arith.constant 64 : index
    %287 = vector.load %arg5[%c0_53, %c64] : memref<1x192xf32, #tpu.memory_space<vmem>>, vector<1x128xf32>
    %288 = vector.broadcast %287 : vector<1x128xf32> to vector<8x128xf32>
    %289 = arith.addf %286, %288 : vector<8x128xf32>
    %cst_54 = arith.constant dense<0xFF800000> : vector<8xf32>
    %290 = vector.multi_reduction <maximumf>, %289, %cst_54 [1] : vector<8x128xf32> to vector<8xf32>
    %291 = vector.shape_cast %290 : vector<8xf32> to vector<8x1xf32>
    %292 = vector.broadcast %291 : vector<8x1xf32> to vector<8x128xf32>
    %293 = arith.subf %289, %292 : vector<8x128xf32>
    %294 = math.exp %293 : vector<8x128xf32>
    %cst_55 = arith.constant dense<0.000000e+00> : vector<8xf32>
    %295 = vector.multi_reduction <add>, %294, %cst_55 [1] : vector<8x128xf32> to vector<8xf32>
    %296 = vector.shape_cast %295 : vector<8xf32> to vector<8x1xf32>
    %297 = math.log %296 : vector<8x1xf32>
    %298 = arith.addf %297, %291 : vector<8x1xf32>
    %299 = tpu.iota {dimensions = array<i32: 1>} : vector<8x128xi32>
    %c0_56 = arith.constant 0 : index
    %c0_57 = arith.constant 0 : index
    %300 = vector.load %arg6[%c0_56, %c0_57] : memref<8x1xi32, #tpu.memory_space<vmem>>, vector<8x1xi32>
    %301 = vector.broadcast %300 : vector<8x1xi32> to vector<8x128xi32>
    %302 = arith.cmpi eq, %299, %301 : vector<8x128xi32>
    %cst_58 = arith.constant 0.000000e+00 : f32
    %303 = vector.broadcast %cst_58 : f32 to vector<8x128xf32>
    %304 = arith.select %302, %289, %303 : vector<8x128xi1>, vector<8x128xf32>
    %cst_59 = arith.constant dense<0.000000e+00> : vector<8xf32>
    %305 = vector.multi_reduction <add>, %304, %cst_59 [1] : vector<8x128xf32> to vector<8xf32>
    %306 = vector.shape_cast %305 : vector<8xf32> to vector<8x1xf32>
    %307 = arith.subf %298, %306 : vector<8x1xf32>
    %308 = vector.shape_cast %307 : vector<8x1xf32> to vector<1x8x1xf32>
    %cst_60 = arith.constant dense<0.000000e+00> : vector<1xf32>
    %309 = vector.multi_reduction <add>, %308, %cst_60 [1, 2] : vector<1x8x1xf32> to vector<1xf32>
    %310 = vector.shape_cast %309 : vector<1xf32> to vector<1x1x1xf32>
    %311 = vector.extract %310[0, 0, 0] : f32 from vector<1x1x1xf32>
    %c0_61 = arith.constant 0 : index
    %c0_62 = arith.constant 0 : index
    %312 = memref.load %arg7[%c0_61, %c0_62] : memref<1x1xf32, #tpu.memory_space<smem>>
    memref.store %311, %arg7[%c0_61, %c0_62] : memref<1x1xf32, #tpu.memory_space<smem>>
    return
  }
}

</mosaic_0001>

<bundles_post_ra>
// kernel: local_predictor_forward.1
= control target key start
LH: loop header
LB: loop body
LE: loop exit
PB: predicated region body
PF: predicated region fallthrough
CT: control target
= control target key end

     0   :  { %v1308_v2 = vmov 0   ;;  %vm106_vm0 = vcmask 261120   ;;  %s1309_s29 = smov 64   ;;  %s1659_s0 = inlined_call_operand.vmem [shape: bf16[64,32], index: 0, kind: input, shape index: {}]   ;;  %s1660_s1 = inlined_call_operand.vmem [shape: bf16[96,192], index: 1, kind: input, shape index: {}]   ;;  %s1661_s2 = inlined_call_operand.vmem [shape: f32[1,256], index: 2, kind: input, shape index: {}]   ;;  %s1662_s3 = inlined_call_operand.vmem [shape: bf16[32,64], index: 3, kind: input, shape index: {}]   ;;  %s1663_s4 = inlined_call_operand.vmem [shape: bf16[32,128], index: 4, kind: input, shape index: {}]   ;;  %s1664_s5 = inlined_call_operand.vmem [shape: f32[1,192], index: 5, kind: input, shape index: {}]   ;;  %s1665_s6 = inlined_call_operand.vmem [shape: s32[8,1], index: 6, kind: input, shape index: {}]   ;;  %s1666_s7 = inlined_call_operand.hbm [shape: f32[1,1], index: 7, kind: output, shape index: {}]  }
   0x1   :  { %v1360_v0 = vld [vmem:[%s1660_s1 + $0x24] ss:$8 sps:$4 sm:$0xff]   ;;  %v1365_v1 = vld [vmem:[%s1660_s1 + $0x20] ss:$8 sps:$4 sm:$0xff]   ;;  %151 = vmatprep.mubr.bf16.mxu0 %v1308_v2  ;;  %268 = vmatprep.mubr.bf16.mxu1 %v1308_v2  ;;  %v1381_v5 = vld [vmem:[%s1660_s1 + $0x34] ss:$8 sps:$4 sm:$0xff]  }
   0x2   :  { %236 = vmatprep.subr.bf16.mxu1 %v1360_v0  ;;  %v1217_v3 = vld [vmem:[%s1660_s1 + $0x4] ss:$8 sps:$4 sm:$0xff]   ;;  %v1219_v4 = vld [vmem:[%s1660_s1] ss:$8 sps:$4 sm:$0xff]   ;;  %1213 = vset.pattern.permute.xlu0 %v1308_v2  ;;  %v1386_v6 = vld [vmem:[%s1660_s1 + $0x30] ss:$8 sps:$4 sm:$0xff]  }
   0x3   :  { %237 = vmatpush1.bf16.msra.mxu1 %v1365_v1  ;;  %119 = vmatprep.subr.bf16.mxu0 %v1217_v3  ;;  %v1223_v7 = vld [vmem:[%s1660_s1 + $0x14] ss:$8 sps:$4 sm:$0xff]   ;;  %v1225_v8 = vld [vmem:[%s1660_s1 + $0x10] ss:$8 sps:$4 sm:$0xff]   ;;  %v1398_v9 = vld [vmem:[%s1660_s1 + $0x44] ss:$8 sps:$4 sm:$0xff]  }
   0x4   :  { %120 = vmatpush1.bf16.msra.mxu0 %v1219_v4  ;;  %238 = vmatprep.subr.bf16.mxu1 %v1381_v5  ;;  %v1404_v10 = vld [vmem:[%s1660_s1 + $0x40] ss:$8 sps:$4 sm:$0xff]   ;;  %v1413_v12 = vld [vmem:[%s1660_s1 + $0x54] ss:$8 sps:$4 sm:$0xff]   ;;  %v1418_v13 = vld [vmem:[%s1660_s1 + $0x50] ss:$8 sps:$4 sm:$0xff]  }
   0x5   :  { %121 = vmatprep.subr.bf16.mxu0 %v1223_v7  ;;  %v1229_v11 = vld [vmem:[%s1659_s0] sm:$0xff]  }
   0x6   :  { %v1112_v14 = vld [vmem:[%s1661_s2 + $0x1] ss:$0 sm:$0xff] }
   0x7   :  { %239 = vmatpush1.bf16.msra.mxu1 %v1386_v6  ;;  %284 = vrot.lane.b32.xlu0 %v1112_v14, %s1309_s29 }
   0x8   :  { %240 = vmatprep.subr.bf16.mxu1 %v1398_v9  ;;  %122 = vmatpush1.bf16.msra.mxu0 %v1225_v8 }
   0x9   :  { %373 = vmatprep.subr.bf16.mxu0 %v1360_v0 }
   0xb   :  { %241 = vmatpush1.bf16.msra.mxu1 %v1404_v10  ;;  %1121 = vmatmul.mubr.msk.bf16.vlgmr.msra.gmra.mrb[0].mxu0 %vm106_vm0, %v1229_v11 }
   0xc   :  { %242 = vmatprep.subr.bf16.mxu1 %v1413_v12  ;;  %374 = vmatpush1.bf16.msra.mxu0 %v1365_v1 }
   0xd   :  { %161 = vmatprep.mubr.bf16.mxu0 %v1308_v2  ;;  %375 = vmatprep.subr.bf16.mxu0 %v1381_v5 }
   0xe   :  { %12 = vsyncpa [#allocation3], 0  ;;  %v56_v15 = vlaneseq  ;;  %v40_v18 = vld [vmem:[%s1661_s2] sm:$0x3]  ;;  %vm232_vm1 = vcmask 523264   ;;  %v1233_v63 = vld [vmem:[%s1659_s0 + $0x8] sm:$0xff]  }
   0xf   :  { %243 = vmatpush1.bf16.msra.mxu1 %v1418_v13  ;;  %v1234_v4 = vld [vmem:[%s1659_s0 + $0x10] sm:$0xff]   ;;  %v1235_v7 = vld [vmem:[%s1659_s0 + $0x18] sm:$0xff]   ;;  %s1310_s16 = smov 96   ;;  %vm1312_vm2 = vmmov 0   ;;  %vm869_vm3 = vcmask 130048   ;;  %vm916_vm4 = vcmask 64512  }
  0x10   :  { %306 = vmatprep.subr.bf16.mxu1 %v1360_v0  ;;  %376 = vmatpush1.bf16.msra.mxu0 %v1386_v6  ;;  %v1450_v16 = vshrl.u32 %v56_v15, 7  ;;  %s1313_s18 = smov 80   ;;  %vm936_vm5 = vcmask 1043456   ;;  %s1314_s19 = smov 112   ;;  %vm1086_vm7 = vcmask 7168  }
  0x11   :  { %377 = vmatprep.subr.bf16.mxu0 %v1398_v9  ;;  %s1315_s26 = smov 16  }
  0x12   :  { %269 = vmatmul.mubr.bf16.vlgmr.msra.gmra.mrb[0].mxu1 %v1308_v2  ;;  %v58_v17 = vsub.s32 0, %v1450_v16  ;;  %v62_v33 = vsub.s32 1, %v1450_v16 }
  0x13   :  { %307 = vmatpush1.bf16.msra.mxu1 %v1365_v1  ;;  %338 = vmatprep.mubr.bf16.mxu1 %v1308_v2 }
  0x14   :  { %308 = vmatprep.subr.bf16.mxu1 %v1381_v5  ;;  %378 = vmatpush1.bf16.msra.mxu0 %v1404_v10  ;;  %v1458_v19 = vrot.slane %v40_v18, %v58_v17  ;;  %v1466_v35 = vrot.slane %v40_v18, %v62_v33 }
  0x15   :  { %379 = vmatprep.subr.bf16.mxu0 %v1413_v12  ;;  %1122 = vmatmul.mubr.msk.bf16.gmra.mrb[4].mxu0 %vm106_vm0, %v1233_v63 }
  0x16   :  { %171 = vmatprep.mubr.bf16.mxu0 %v1308_v2 }
  0x17   :  { %309 = vmatpush1.bf16.msra.mxu1 %v1386_v6 }
  0x18   :  { %310 = vmatprep.subr.bf16.mxu1 %v1398_v9  ;;  %380 = vmatpush1.bf16.msra.mxu0 %v1418_v13 }
  0x19   :  { %507 = vmatprep.subr.bf16.mxu0 %v1360_v0 }
  0x1b   :  { %311 = vmatpush1.bf16.msra.mxu1 %v1404_v10 }
  0x1c   :  { %312 = vmatprep.subr.bf16.mxu1 %v1413_v12 }
  0x1d   :  { %1123 = vmatmul.mubr.msk.bf16.gmra.mrb[8].mxu0 %vm106_vm0, %v1234_v4 }
  0x1e   :  { %181 = vmatprep.mubr.bf16.mxu0 %v1308_v2 }
  0x1f   :  { %313 = vmatpush1.bf16.msra.mxu1 %v1418_v13 }
  0x20   :  { %440 = vmatprep.subr.bf16.mxu1 %v1360_v0 }
  0x25   :  { %1124 = vmatmul.mubr.msk.bf16.gmra.mrb[12].mxu0 %vm106_vm0, %v1235_v7 }
  0x26   :  { %405 = vmatprep.mubr.bf16.mxu0 %v1308_v2 }
  0x79   :  { %v1462_v34 = vpop.permute.xlu0 %284 }
  0xde   :  { %v153_v20 = vpop.f32.mrb[0].mxu0 }
  0xdf   :  { %v155_v21 = vpop.f32.mrb[1].mxu0  ;;  %v154_v23 = vadd.f32 %v153_v20, %v1458_v19 }
  0xe0   :  { %v157_v22 = vpop.f32.mrb[2].mxu0  ;;  %v156_v38 = vadd.f32 %v155_v21, %v1466_v35 }
  0xe1   :  { %v159_v24 = vpop.f32.mrb[3].mxu0  ;;  %v158_v49 = vadd.f32 %v157_v22, %v1458_v19 }
  0xe2   :  { %v160_v60 = vadd.f32 %v159_v24, %v1466_v35 }
  0xe5   :  { %v270_v25 = vpop.f32.mrb[0].mxu1 }
  0xe6   :  { %v277_v26 = vadd.f32 %v270_v25, %v154_v23  ;;  %v272_v27 = vpop.f32.mrb[1].mxu1 }
  0xe7   :  { %v274_v28 = vpop.f32.mrb[2].mxu1  ;;  %v287_v36 = vadd.f32 %v1462_v34, %v272_v27 }
  0xe8   :  { %v1133_v29 = vmul.f32 -1.442695, %v277_v26  ;;  %v275_v30 = vpop.f32.mrb[3].mxu1  ;;  %v163_v22 = vpop.f32.mrb[4].mxu0 }
  0xe9   :  { %v165_v23 = vpop.f32.mrb[5].mxu0 }
  0xea   :  { %1240 = vpow2.f32 %v1133_v29  ;;  %v167_v24 = vpop.f32.mrb[6].mxu0 }
  0xeb   :  { %v1502_v25 = vpop.f32.mrb[7].mxu0 }
  0xf0   :  { %v1504_v26 = vpop.f32.mrb[8].mxu0 }
  0xf1   :  { %v1506_v27 = vpop.f32.mrb[9].mxu0 }
  0xf2   :  { %v1508_v28 = vpop.f32.mrb[10].mxu0 }
  0xf3   :  { %v1510_v29 = vpop.f32.mrb[11].mxu0 }
  0xf4   :  { %v1241_v31 = vpop.eup %1240 }
  0xf5   :  { %v281_v32 = vadd.f32 1.0, %v1241_v31 }
  0xf7   :  { %1242 = vrcp.f32 %v281_v32 }
  0xf8   :  { %v1512_v30 = vpop.f32.mrb[12].mxu0 }
  0xf9   :  { %v1514_v31 = vpop.f32.mrb[13].mxu0 }
  0xfa   :  { %v1516_v32 = vpop.f32.mrb[14].mxu0 }
 0x101   :  { %v1243_v37 = vpop.eup %1242 }
 0x102   :  { %v288_v39 = vmul.f32 %v1243_v37, %v287_v36  ;;  %v291_v42 = vsub.f32 1.0, %v1243_v37  ;;  %v297_v44 = vmul.f32 0.0, %v1243_v37  ;;  %v1518_v36 = vpop.f32.mrb[15].mxu0 }
 0x104   :  { %v289_v40 = vadd.f32 %v288_v39, %v156_v38  ;;  %v164_v38 = vadd.f32 %v163_v22, %v1458_v19 }
 0x106   :  { %1244 = vtanh.f32 %v289_v40 }
 0x110   :  { %v1245_v41 = vpop.eup %1244 }
 0x111   :  { %293 = vrot.lane.b32.xlu0 %v1245_v41, %s1309_s29 }
 0x183   :  { %v294_v43 = vpop.permute.xlu0 %293 }
 0x184   :  { %v296_v45 = vmul.f32 %v294_v43, %v291_v42 }
 0x186   :  { %v298_v46 = vadd.f32 %v297_v44, %v296_v45 }
 0x188   :  { %v299_v47 = vpack.c.bf16 %v298_v46, %v298_v46 }
 0x18a   :  { %301 = vrot.lane.b32.xlu1 %v299_v47, %s1309_s29 }
 0x1fc   :  { %v302_v48 = vpop.permute.xlu1 %301 }
 0x1fd   :  { %1134 = vmatmul.mubr.msk.bf16.vlgmr.msra.gmra.mrb[4].mxu1 %vm232_vm1, %v302_v48 }
 0x1fe   :  { %441 = vmatpush1.bf16.msra.mxu1 %v1365_v1  ;;  %472 = vmatprep.mubr.bf16.mxu1 %v1308_v2 }
 0x1ff   :  { %442 = vmatprep.subr.bf16.mxu1 %v1381_v5 }
 0x202   :  { %443 = vmatpush1.bf16.msra.mxu1 %v1386_v6 }
 0x203   :  { %444 = vmatprep.subr.bf16.mxu1 %v1398_v9 }
 0x206   :  { %445 = vmatpush1.bf16.msra.mxu1 %v1404_v10 }
 0x207   :  { %446 = vmatprep.subr.bf16.mxu1 %v1413_v12 }
 0x20a   :  { %447 = vmatpush1.bf16.msra.mxu1 %v1418_v13 }
 0x20b   :  { %574 = vmatprep.subr.bf16.mxu1 %v1360_v0 }
 0x2d0   :  { %v340_v50 = vpop.f32.mrb[4].mxu1 }
 0x2d1   :  { %v347_v51 = vadd.f32 %v340_v50, %v158_v49  ;;  %v342_v52 = vpop.f32.mrb[5].mxu1  ;;  %v166_v49 = vadd.f32 %v165_v23, %v1466_v35 }
 0x2d2   :  { %v344_v53 = vpop.f32.mrb[6].mxu1  ;;  %v354_v58 = vadd.f32 %v342_v52, %v1462_v34 }
 0x2d3   :  { %v1135_v54 = vmul.f32 -1.442695, %v347_v51  ;;  %v345_v55 = vpop.f32.mrb[7].mxu1 }
 0x2d5   :  { %1246 = vpow2.f32 %v1135_v54 }
 0x2df   :  { %v1247_v56 = vpop.eup %1246 }
 0x2e0   :  { %v351_v57 = vadd.f32 1.0, %v1247_v56 }
 0x2e2   :  { %1248 = vrcp.f32 %v351_v57 }
 0x2ec   :  { %v1249_v59 = vpop.eup %1248 }
 0x2ed   :  { %v355_v61 = vmul.f32 %v1249_v59, %v354_v58  ;;  %v358_v8 = vsub.f32 1.0, %v1249_v59  ;;  %v364_v14 = vmul.f32 %v1249_v59, %v298_v46 }
 0x2ef   :  { %v356_v62 = vadd.f32 %v355_v61, %v160_v60  ;;  %v168_v60 = vadd.f32 %v167_v24, %v1458_v19 }
 0x2f1   :  { %1250 = vtanh.f32 %v356_v62 }
 0x2fb   :  { %v1251_v3 = vpop.eup %1250 }
 0x2fc   :  { %360 = vrot.lane.b32.xlu1 %v1251_v3, %s1309_s29 }
 0x36e   :  { %v361_v11 = vpop.permute.xlu1 %360 }
 0x36f   :  { %v363_v18 = vmul.f32 %v361_v11, %v358_v8 }
 0x371   :  { %v365_v20 = vadd.f32 %v364_v14, %v363_v18 }
 0x373   :  { %v366_v21 = vpack.c.bf16 %v365_v20, %v365_v20 }
 0x375   :  { %368 = vrot.lane.b32.xlu0 %v366_v21, %s1309_s29 }
 0x3e7   :  { %v369_v37 = vpop.permute.xlu0 %368 }
 0x3e8   :  { %1136 = vmatmul.mubr.msk.bf16.vlgmr.msra.gmra.mrb[16].mxu0 %vm232_vm1, %v369_v37 }
 0x3e9   :  { %508 = vmatpush1.bf16.msra.mxu0 %v1365_v1  ;;  %539 = vmatprep.mubr.bf16.mxu0 %v1308_v2 }
 0x3ea   :  { %509 = vmatprep.subr.bf16.mxu0 %v1381_v5 }
 0x3ed   :  { %510 = vmatpush1.bf16.msra.mxu0 %v1386_v6 }
 0x3ee   :  { %511 = vmatprep.subr.bf16.mxu0 %v1398_v9 }
 0x3f1   :  { %512 = vmatpush1.bf16.msra.mxu0 %v1404_v10 }
 0x3f2   :  { %513 = vmatprep.subr.bf16.mxu0 %v1413_v12 }
 0x3f5   :  { %514 = vmatpush1.bf16.msra.mxu0 %v1418_v13 }
 0x3f6   :  { %641 = vmatprep.subr.bf16.mxu0 %v1360_v0 }
 0x4bb   :  { %v407_v39 = vpop.f32.mrb[16].mxu0 }
 0x4bc   :  { %v414_v40 = vadd.f32 %v407_v39, %v164_v38  ;;  %v409_v41 = vpop.f32.mrb[17].mxu0 }
 0x4bd   :  { %v411_v42 = vpop.f32.mrb[18].mxu0  ;;  %v421_v47 = vadd.f32 %v409_v41, %v1462_v34 }
 0x4be   :  { %v1137_v43 = vmul.f32 -1.442695, %v414_v40  ;;  %v412_v44 = vpop.f32.mrb[19].mxu0 }
 0x4c0   :  { %1252 = vpow2.f32 %v1137_v43 }
 0x4ca   :  { %v1253_v45 = vpop.eup %1252 }
 0x4cb   :  { %v418_v46 = vadd.f32 1.0, %v1253_v45 }
 0x4cd   :  { %1254 = vrcp.f32 %v418_v46 }
 0x4d7   :  { %v1255_v48 = vpop.eup %1254 }
 0x4d8   :  { %v422_v50 = vmul.f32 %v1255_v48, %v421_v47  ;;  %v425_v53 = vsub.f32 1.0, %v1255_v48  ;;  %v431_v55 = vmul.f32 %v1255_v48, %v365_v20  ;;  %v170_v20 = vadd.f32 %v1502_v25, %v1466_v35 }
 0x4d9   :  { %v174_v25 = vadd.f32 %v1504_v26, %v1458_v19 }
 0x4da   :  { %v423_v51 = vadd.f32 %v422_v50, %v166_v49 }
 0x4dc   :  { %1256 = vtanh.f32 %v423_v51 }
 0x4e6   :  { %v1257_v52 = vpop.eup %1256 }
 0x4e7   :  { %427 = vrot.lane.b32.xlu1 %v1257_v52, %s1309_s29  ;;  %v176_v52 = vadd.f32 %v1506_v27, %v1466_v35  ;;  %v178_v27 = vadd.f32 %v1508_v28, %v1458_v19 }
 0x559   :  { %v428_v54 = vpop.permute.xlu1 %427 }
 0x55a   :  { %v430_v56 = vmul.f32 %v428_v54, %v425_v53 }
 0x55c   :  { %v432_v57 = vadd.f32 %v431_v55, %v430_v56 }
 0x55e   :  { %v433_v58 = vpack.c.bf16 %v432_v57, %v432_v57 }
 0x560   :  { %435 = vrot.lane.b32.xlu0 %v433_v58, %s1309_s29 }
 0x5d2   :  { %v436_v59 = vpop.permute.xlu0 %435 }
 0x5d3   :  { %1138 = vmatmul.mubr.msk.bf16.vlgmr.msra.gmra.mrb[8].mxu1 %vm232_vm1, %v436_v59 }
 0x5d4   :  { %575 = vmatpush1.bf16.msra.mxu1 %v1365_v1  ;;  %606 = vmatprep.mubr.bf16.mxu1 %v1308_v2 }
 0x5d5   :  { %576 = vmatprep.subr.bf16.mxu1 %v1381_v5 }
 0x5d8   :  { %577 = vmatpush1.bf16.msra.mxu1 %v1386_v6 }
 0x5d9   :  { %578 = vmatprep.subr.bf16.mxu1 %v1398_v9 }
 0x5dc   :  { %579 = vmatpush1.bf16.msra.mxu1 %v1404_v10 }
 0x5dd   :  { %580 = vmatprep.subr.bf16.mxu1 %v1413_v12 }
 0x5e0   :  { %581 = vmatpush1.bf16.msra.mxu1 %v1418_v13 }
 0x5e1   :  { %708 = vmatprep.subr.bf16.mxu1 %v1360_v0 }
 0x6a6   :  { %v474_v61 = vpop.f32.mrb[8].mxu1 }
 0x6a7   :  { %v481_v62 = vadd.f32 %v474_v61, %v168_v60  ;;  %v476_v63 = vpop.f32.mrb[9].mxu1 }
 0x6a8   :  { %v478_v3 = vpop.f32.mrb[10].mxu1  ;;  %v488_v14 = vadd.f32 %v476_v63, %v1462_v34 }
 0x6a9   :  { %v1139_v4 = vmul.f32 -1.442695, %v481_v62  ;;  %v479_v7 = vpop.f32.mrb[11].mxu1 }
 0x6ab   :  { %1258 = vpow2.f32 %v1139_v4 }
 0x6b5   :  { %v1259_v8 = vpop.eup %1258 }
 0x6b6   :  { %v485_v11 = vadd.f32 1.0, %v1259_v8 }
 0x6b8   :  { %1260 = vrcp.f32 %v485_v11 }
 0x6c2   :  { %v1261_v18 = vpop.eup %1260 }
 0x6c3   :  { %v489_v21 = vmul.f32 %v1261_v18, %v488_v14  ;;  %v492_v23 = vsub.f32 1.0, %v1261_v18  ;;  %v498_v37 = vmul.f32 %v1261_v18, %v432_v57 }
 0x6c5   :  { %v490_v0 = vadd.f32 %v489_v21, %v170_v20 }
 0x6c7   :  { %1262 = vtanh.f32 %v490_v0 }
 0x6d1   :  { %v1263_v22 = vpop.eup %1262 }
 0x6d2   :  { %494 = vrot.lane.b32.xlu1 %v1263_v22, %s1309_s29 }
 0x744   :  { %v495_v24 = vpop.permute.xlu1 %494 }
 0x745   :  { %v497_v38 = vmul.f32 %v495_v24, %v492_v23 }
 0x747   :  { %v1550_v39 = vadd.f32 %v498_v37, %v497_v38 }
 0x749   :  { %v500_v40 = vpack.c.bf16 %v1550_v39, %v1550_v39 }
 0x74b   :  { %502 = vrot.lane.b32.xlu0 %v500_v40, %s1309_s29 }
 0x7bd   :  { %v503_v41 = vpop.permute.xlu0 %502 }
 0x7be   :  { %1140 = vmatmul.mubr.msk.bf16.vlgmr.msra.gmra.mrb[20].mxu0 %vm232_vm1, %v503_v41 }
 0x7bf   :  { %642 = vmatpush1.bf16.msra.mxu0 %v1365_v1  ;;  %673 = vmatprep.mubr.bf16.mxu0 %v1308_v2 }
 0x7c0   :  { %643 = vmatprep.subr.bf16.mxu0 %v1381_v5 }
 0x7c3   :  { %644 = vmatpush1.bf16.msra.mxu0 %v1386_v6 }
 0x7c4   :  { %645 = vmatprep.subr.bf16.mxu0 %v1398_v9 }
 0x7c7   :  { %646 = vmatpush1.bf16.msra.mxu0 %v1404_v10 }
 0x7c8   :  { %647 = vmatprep.subr.bf16.mxu0 %v1413_v12 }
 0x7cb   :  { %648 = vmatpush1.bf16.msra.mxu0 %v1418_v13 }
 0x891   :  { %v541_v42 = vpop.f32.mrb[20].mxu0 }
 0x892   :  { %v548_v43 = vadd.f32 %v541_v42, %v174_v25  ;;  %v543_v44 = vpop.f32.mrb[21].mxu0 }
 0x893   :  { %v545_v45 = vpop.f32.mrb[22].mxu0  ;;  %v555_v50 = vadd.f32 %v543_v44, %v1462_v34  ;;  %v186_v44 = vadd.f32 %v1514_v31, %v1466_v35  ;;  %v188_v31 = vadd.f32 %v1516_v32, %v1458_v19  ;;  %v1236_v32 = vld [vmem:[%s1662_s3] sm:$0xff]  }
 0x894   :  { %v1141_v46 = vmul.f32 -1.442695, %v548_v43  ;;  %v546_v47 = vpop.f32.mrb[23].mxu0  ;;  %1169 = vmatprep.subr.bf16.mxu0 %v1236_v32 }
 0x896   :  { %1264 = vpow2.f32 %v1141_v46 }
 0x8a0   :  { %v1265_v48 = vpop.eup %1264 }
 0x8a1   :  { %v552_v49 = vadd.f32 1.0, %v1265_v48 }
 0x8a3   :  { %1266 = vrcp.f32 %v552_v49 }
 0x8ad   :  { %v1267_v51 = vpop.eup %1266 }
 0x8ae   :  { %v556_v53 = vmul.f32 %v1267_v51, %v555_v50  ;;  %v559_v55 = vsub.f32 1.0, %v1267_v51  ;;  %v565_v57 = vmul.f32 %v1267_v51, %v1550_v39 }
 0x8b0   :  { %v557_v54 = vadd.f32 %v556_v53, %v176_v52 }
 0x8b2   :  { %1268 = vtanh.f32 %v557_v54 }
 0x8bc   :  { %v1269_v26 = vpop.eup %1268 }
 0x8bd   :  { %561 = vrot.lane.b32.xlu1 %v1269_v26, %s1309_s29 }
 0x92f   :  { %v562_v56 = vpop.permute.xlu1 %561 }
 0x930   :  { %v564_v58 = vmul.f32 %v562_v56, %v559_v55 }
 0x932   :  { %v566_v59 = vadd.f32 %v565_v57, %v564_v58 }
 0x934   :  { %v567_v60 = vpack.c.bf16 %v566_v59, %v566_v59 }
 0x936   :  { %569 = vrot.lane.b32.xlu0 %v567_v60, %s1309_s29 }
 0x9a8   :  { %v570_v61 = vpop.permute.xlu0 %569 }
 0x9a9   :  { %1142 = vmatmul.mubr.msk.bf16.vlgmr.msra.gmra.mrb[12].mxu1 %vm232_vm1, %v570_v61 }
 0x9aa   :  { %709 = vmatpush1.bf16.msra.mxu1 %v1365_v1  ;;  %740 = vmatprep.mubr.bf16.mxu1 %v1308_v2 }
 0x9ab   :  { %710 = vmatprep.subr.bf16.mxu1 %v1381_v5 }
 0x9ae   :  { %711 = vmatpush1.bf16.msra.mxu1 %v1386_v6 }
 0x9af   :  { %712 = vmatprep.subr.bf16.mxu1 %v1398_v9 }
 0x9b2   :  { %713 = vmatpush1.bf16.msra.mxu1 %v1404_v10 }
 0x9b3   :  { %714 = vmatprep.subr.bf16.mxu1 %v1413_v12  ;;  %v180_v12 = vadd.f32 %v1510_v29, %v1466_v35  ;;  %v184_v29 = vadd.f32 %v1512_v30, %v1458_v19 }
 0x9b6   :  { %715 = vmatpush1.bf16.msra.mxu1 %v1418_v13 }
 0xa7c   :  { %v608_v62 = vpop.f32.mrb[12].mxu1 }
 0xa7d   :  { %v615_v63 = vadd.f32 %v608_v62, %v178_v27  ;;  %v610_v1 = vpop.f32.mrb[13].mxu1  ;;  %v190_v62 = vadd.f32 %v1518_v36, %v1466_v35 }
 0xa7e   :  { %v612_v3 = vpop.f32.mrb[14].mxu1  ;;  %v622_v9 = vadd.f32 %v610_v1, %v1462_v34 }
 0xa7f   :  { %v1143_v2 = vmul.f32 -1.442695, %v615_v63  ;;  %v613_v4 = vpop.f32.mrb[15].mxu1  ;;  %v1237_v3 = vld [vmem:[%s1662_s3 + $0x8] sm:$0xff]  }
 0xa81   :  { %1270 = vpow2.f32 %v1143_v2 }
 0xa8b   :  { %v1271_v5 = vpop.eup %1270 }
 0xa8c   :  { %v619_v6 = vadd.f32 1.0, %v1271_v5 }
 0xa8e   :  { %1272 = vrcp.f32 %v619_v6 }
 0xa98   :  { %v1273_v10 = vpop.eup %1272 }
 0xa99   :  { %v623_v13 = vmul.f32 %v1273_v10, %v622_v9  ;;  %v626_v8 = vsub.f32 1.0, %v1273_v10  ;;  %v632_v14 = vmul.f32 %v1273_v10, %v566_v59 }
 0xa9b   :  { %v624_v7 = vadd.f32 %v623_v13, %v180_v12 }
 0xa9d   :  { %1274 = vtanh.f32 %v624_v7 }
 0xaa7   :  { %v1275_v28 = vpop.eup %1274 }
 0xaa8   :  { %628 = vrot.lane.b32.xlu1 %v1275_v28, %s1309_s29 }
 0xb1a   :  { %v629_v11 = vpop.permute.xlu1 %628 }
 0xb1b   :  { %v631_v18 = vmul.f32 %v629_v11, %v626_v8  ;;  %v1311_v8 = vmov 0.0  }
 0xb1c   :  { %1183 = vmatprep.subr.bf16.mxu1 %v1311_v8 }
 0xb1d   :  { %v633_v20 = vadd.f32 %v632_v14, %v631_v18 }
 0xb1f   :  { %v634_v21 = vpack.c.bf16 %v633_v20, %v633_v20 }
 0xb21   :  { %636 = vrot.lane.b32.xlu0 %v634_v21, %s1309_s29 }
 0xb93   :  { %v637_v0 = vpop.permute.xlu0 %636 }
 0xb94   :  { %1144 = vmatmul.mubr.msk.bf16.vlgmr.msra.gmra.mrb[24].mxu0 %vm232_vm1, %v637_v0 }
 0xb95   :  { %1170 = vmatpush3.bf16.msra.mxu0 %v1236_v32 }
 0xb96   :  { %1171 = vmatprep.subr.bf16.mxu0 %v1237_v3 }
 0xb99   :  { %1172 = vmatpush3.bf16.msra.mxu0 %v1237_v3 }
 0xb9a   :  { %1177 = vmatprep.subr.bf16.mxu0 %v1311_v8 }
 0xc67   :  { %v675_v22 = vpop.f32.mrb[24].mxu0 }
 0xc68   :  { %v682_v23 = vadd.f32 %v675_v22, %v184_v29  ;;  %v677_v24 = vpop.f32.mrb[25].mxu0 }
 0xc69   :  { %v679_v37 = vpop.f32.mrb[26].mxu0  ;;  %v689_v42 = vadd.f32 %v677_v24, %v1462_v34 }
 0xc6a   :  { %v1145_v38 = vmul.f32 -1.442695, %v682_v23  ;;  %v680_v40 = vpop.f32.mrb[27].mxu0 }
 0xc6c   :  { %1276 = vpow2.f32 %v1145_v38 }
 0xc76   :  { %v1277_v41 = vpop.eup %1276 }
 0xc77   :  { %v686_v25 = vadd.f32 1.0, %v1277_v41 }
 0xc79   :  { %1278 = vrcp.f32 %v686_v25 }
 0xc83   :  { %v1279_v43 = vpop.eup %1278 }
 0xc84   :  { %v690_v45 = vmul.f32 %v1279_v43, %v689_v42  ;;  %v693_v47 = vsub.f32 1.0, %v1279_v43  ;;  %v699_v49 = vmul.f32 %v1279_v43, %v633_v20 }
 0xc86   :  { %v691_v46 = vadd.f32 %v690_v45, %v186_v44 }
 0xc88   :  { %1280 = vtanh.f32 %v691_v46 }
 0xc92   :  { %v1281_v30 = vpop.eup %1280 }
 0xc93   :  { %695 = vrot.lane.b32.xlu1 %v1281_v30, %s1309_s29 }
 0xd05   :  { %v696_v48 = vpop.permute.xlu1 %695 }
 0xd06   :  { %v698_v50 = vmul.f32 %v696_v48, %v693_v47 }
 0xd08   :  { %v700_v51 = vadd.f32 %v699_v49, %v698_v50 }
 0xd0a   :  { %v701_v52 = vpack.c.bf16 %v700_v51, %v700_v51 }
 0xd0c   :  { %703 = vrot.lane.b32.xlu0 %v701_v52, %s1309_s29 }
 0xd7e   :  { %v704_v53 = vpop.permute.xlu0 %703 }
 0xd7f   :  { %1146 = vmatmul.mubr.msk.bf16.vlgmr.msra.gmra.mrb[16].mxu1 %vm232_vm1, %v704_v53 }
 0xd80   :  { %1185 = vmatprep.mubr.msk.bf16.mxu1 %vm1312_vm2, %v1311_v8 }
 0xe52   :  { %v742_v54 = vpop.f32.mrb[16].mxu1 }
 0xe53   :  { %v749_v26 = vadd.f32 %v742_v54, %v188_v31  ;;  %v744_v55 = vpop.f32.mrb[17].mxu1 }
 0xe54   :  { %v746_v56 = vpop.f32.mrb[18].mxu1  ;;  %v756_v61 = vadd.f32 %v744_v55, %v1462_v34  ;;  %v1238_v55 = vld [vmem:[%s1663_s4] sm:$0xff]  }
 0xe55   :  { %v1147_v57 = vmul.f32 -1.442695, %v749_v26  ;;  %v747_v58 = vpop.f32.mrb[19].mxu1  ;;  %v1239_v56 = vld [vmem:[%s1663_s4 + $0x8] sm:$0xff]  }
 0xe57   :  { %1282 = vpow2.f32 %v1147_v57  ;;  %v994_v57 = vld [vmem:[%s1664_s5] sm:$0x3] }
 0xe58   :  { %v999_v58 = vrot.slane %v994_v57, %v58_v17 }
 0xe61   :  { %v1283_v59 = vpop.eup %1282 }
 0xe62   :  { %v753_v60 = vadd.f32 1.0, %v1283_v59 }
 0xe64   :  { %1284 = vrcp.f32 %v753_v60 }
 0xe6e   :  { %v1285_v27 = vpop.eup %1284 }
 0xe6f   :  { %v757_v63 = vmul.f32 %v1285_v27, %v756_v61  ;;  %v760_v2 = vsub.f32 1.0, %v1285_v27  ;;  %v766_v4 = vmul.f32 %v1285_v27, %v700_v51  ;;  %v1003_v61 = vrot.slane %v994_v57, %v62_v33 }
 0xe70   :  { %v1076_v33 = vand.u32 127, %v56_v15 }
 0xe71   :  { %v758_v1 = vadd.f32 %v757_v63, %v190_v62  ;;  %v1077_v63 = vld [vmem:[%s1665_s6] sm:$0xff] }
 0xe73   :  { %1286 = vtanh.f32 %v758_v1 }
 0xe7d   :  { %v1287_v19 = vpop.eup %1286 }
 0xe7e   :  { %762 = vrot.lane.b32.xlu1 %v1287_v19, %s1309_s29 }
 0xef0   :  { %v763_v34 = vpop.permute.xlu1 %762 }
 0xef1   :  { %v765_v5 = vmul.f32 %v763_v34, %v760_v2 }
 0xef3   :  { %v767_v35 = vadd.f32 %v766_v4, %v765_v5 }
 0xef5   :  { %v1208_v36 = vpack.i.bf16 %v767_v35, %v1550_v39  ;;  %v1148_v39 = vld [vmem:[%s1664_s5] ss:$0 sm:$0xff] }
 0xef7   :  { %1209 = vrot.lane.b32.xlu0 %v1208_v36, %s1310_s16 }
 0xf69   :  { %v1210_v6 = vpop.permute.xlu0 %1209 }
 0xf6a   :  { %v1212_v9 = vunpack.i.h.bf16 %v1210_v6  ;;  %v1211_v10 = vunpack.i.l.bf16 %v1210_v6 }
 0xf6c   :  { %v777_v12 = vpack.c.bf16 %v1212_v9, %v1212_v9  ;;  %v776_v13 = vpack.c.bf16 %v1211_v10, %v767_v35 }
 0xf6e   :  { %793 = vrot.lane.b32.xlu0 %v777_v12, %s1309_s29  ;;  %791 = vrot.lane.b32.xlu1 %v776_v13, %s1309_s29 }
 0xfe0   :  { %v794_v7 = vpop.permute.xlu0 %793  ;;  %v792_v28 = vpop.permute.xlu1 %791 }
 0xfe1   :  { %1173 = vmatprep.mubr.msk.bf16.mxu0 %vm106_vm0, %v792_v28 }
 0xfe2   :  { %1174 = vmatmul.mubr.msk.bf16.vlgmr.msra.gmra.mrb[28].mxu0 %vm106_vm0, %v794_v7 }
 0xfe3   :  { %1179 = vmatprep.mubr.msk.bf16.mxu0 %vm1312_vm2, %v1311_v8 }
0x10b5   :  { %v1175_v11 = vpop.f32.mrb[28].mxu0 }
0x10b6   :  { %v856_v14 = vadd.f32 %v1175_v11, %v1148_v39  ;;  %v847_v18 = vpop.f32.mrb[29].mxu0 }
0x10b7   :  { %v848_v20 = vadd.f32 %v1148_v39, %v847_v18  ;;  %v1176_v21 = vpop.f32.mrb[30].mxu0 }
0x10b8   :  { %v850_v0 = vpop.f32.mrb[31].mxu0  ;;  %v863_v45 = vmax.f32 %v856_v14, 0.0 }
0x10b9   :  { %v851_v29 = vadd.f32 %v1148_v39, %v850_v0  ;;  %v861_v38 = vmax.f32 %v848_v20, 0.0 }
0x10ba   :  { %v929_v46 = vpack.c.bf16 %v863_v45, %v863_v45 }
0x10bb   :  { %v862_v22 = vmax.f32 %v851_v29, 0.0  ;;  %v864_v40 = vpack.c.bf16 %v861_v38, %v861_v38 }
0x10bd   :  { %v865_v23 = vpack.c.bf16 %v862_v22, %v862_v22 }
0x10bf   :  { %867 = vrot.lane.b32.xlu1 %v865_v23, %s1310_s16 }
0x1131   :  { %v868_v24 = vpop.permute.xlu1 %867 }
0x1132   :  { %v874_v37 = vsel %vm869_vm3, %v868_v24, 0 }
0x1133   :  { %1178 = vmatpush3.bf16.xpose.msra.mxu0 %v874_v37 }
0x1134   :  { %1189 = vmatprep.subr.bf16.mxu0 %v1311_v8 }
0x113a   :  { %1180 = vmatmul.mubr.msk.bf16.vlgmr.msra.gmra.mrb[32].mxu0 %vm869_vm3, %v864_v40 }
0x113b   :  { %1193 = vmatprep.mubr.msk.bf16.mxu0 %vm1312_vm2, %v1311_v8  ;;  %1190 = vmatpush3.bf16.msra.mxu0 %v1238_v55 }
0x113c   :  { %1191 = vmatprep.subr.bf16.mxu0 %v1311_v8 }
0x113f   :  { %1192 = vmatpush3.bf16.msra.mxu0 %v1239_v56 }
0x120d   :  { %v910_v41 = vpop.f32.mrb[32].mxu0 }
0x120e   :  { %v1181_v25 = vpop.f32.mrb[33].mxu0  ;;  %v917_v42 = vsel %vm916_vm4, %v910_v41, -inf }
0x120f   :  { %918 = vmax.xlane.f32.xlu0 %v917_v42  ;;  %v913_v43 = vpop.f32.mrb[34].mxu0 }
0x1210   :  { %v1182_v44 = vpop.f32.mrb[35].mxu0 }
0x1225   :  { %931 = vrot.lane.b32.xlu0 %v929_v46, %s1313_s18 }
0x129c   :  { %v919_v30 = vpop.xlane.xlu0 %918 }
0x129d   :  { %v920_v47 = vsub.f32 %v910_v41, %v919_v30 }
0x129f   :  { %v921_v48 = vmul.f32 1.442695, %v920_v47 }
0x12a0   :  { %v932_v49 = vpop.permute.xlu0 %931 }
0x12a1   :  { %1288 = vpow2.f32 %v921_v48  ;;  %v938_v50 = vsel %vm936_vm5, %v932_v49, 0 }
0x12a2   :  { %1184 = vmatpush3.bf16.msra.mxu1 %v938_v50 }
0x12ab   :  { %v1289_v51 = vpop.eup %1288 }
0x12ac   :  { %v923_v52 = vsel %vm916_vm4, %v1289_v51, 0.0 }
0x12ad   :  { %924 = vadd.xlane.f32.xlu1 %v923_v52 }
0x12be   :  { %981 = vrot.lane.b32.xlu1 %v861_v38, %s1314_s19 }
0x12c2   :  { %1016 = vrot.lane.b32.xlu1 %v999_v58, %s1309_s29 }
0x133a   :  { %v925_v53 = vpop.xlane.xlu1 %924 }
0x133b   :  { %1290 = vrcp.f32 %v925_v53 }
0x133e   :  { %v982_v1 = vpop.permute.xlu1 %981 }
0x1342   :  { %v1017_v2 = vpop.permute.xlu1 %1016 }
0x1345   :  { %v1291_v31 = vpop.eup %1290 }
0x1346   :  { %v927_v54 = vmul.f32 %v1291_v31, %v1289_v51 }
0x1348   :  { %v928_v26 = vpack.c.bf16 %v927_v54, %v927_v54 }
0x134a   :  { %1186 = vmatmul.mubr.msk.bf16.vlgmr.msra.gmra.mrb[20].mxu1 %vm916_vm4, %v928_v26 }
0x141d   :  { %v974_v59 = vpop.f32.mrb[20].mxu1 }
0x141e   :  { %985 = vrot.lane.b32.xlu0 %v974_v59, %s1315_s26  ;;  %v1187_v60 = vpop.f32.mrb[21].mxu1 }
0x141f   :  { %v977_v27 = vpop.f32.mrb[22].mxu1 }
0x1420   :  { %v1188_v62 = vpop.f32.mrb[23].mxu1 }
0x1422   :  { %1018 = vrot.lane.b32.xlu0 %v1003_v61, %s1309_s29  ;;  %s1296_s29 = scalar_lea.hbm %s1666_s7, 16 }
0x1423   :  { %p1297_p0 = scmp.ne.s32.totalorder %s1666_s7, %s1296_s29  ;;  %p1300_p1 = scmp.lt.u32.totalorder %s1296_s29, %s1666_s7 }
0x1425   :  { %p1302_p2 = pnand %p1300_p1, %p1297_p0 }
0x1426   :  { %1079 = vperm.xlu0 %1213, %v1077_v63  }
0x1490   :  { %v986_v17 = vpop.permute.xlu0 %985 }
0x1491   :  { %v988_v19 = vsel %vm869_vm3, %v982_v1, %v986_v17 }
0x1492   :  { %v989_v32 = vpack.c.bf16 %v988_v19, %v988_v19 }
0x1494   :  { %1194 = vmatmul.mubr.msk.bf16.vlgmr.msra.gmra.mrb[36].mxu0 %vm106_vm0, %v989_v32  ;;  %v1019_v3 = vpop.permute.xlu0 %1018 }
0x1495   :  { %v1020_v16 = vsel %vm232_vm1, %v1017_v2, %v1019_v3 }
0x14a5   :  { %v1080_v4 = vpop.permute.xlu0 %1079 }
0x14a6   :  { %vm1081_vm6 = vcmp.eq.s32.totalorder %v1076_v33, %v1080_v4 }
0x1567   :  { %v1059_v34 = vpop.f32.mrb[36].mxu0 }
0x1568   :  { %v1060_v5 = vadd.f32 %v1059_v34, %v1020_v16  ;;  %v1195_v35 = vpop.f32.mrb[37].mxu0 }
0x1569   :  { %v1062_v36 = vpop.f32.mrb[38].mxu0 }
0x156a   :  { %v1196_v6 = vpop.f32.mrb[39].mxu0  ;;  %1065 = vmax.xlane.f32.xlu1 %v1060_v5  ;;  %v1082_v9 = vsel %vm1081_vm6, %v1060_v5, 0.0 }
0x156e   :  { %1083 = vadd.xlane.f32.xlu1 %v1082_v9 }
0x15f7   :  { %v1066_v10 = vpop.xlane.xlu1 %1065 }
0x15f8   :  { %v1067_v12 = vsub.f32 %v1060_v5, %v1066_v10 }
0x15fa   :  { %v1068_v13 = vmul.f32 1.442695, %v1067_v12 }
0x15fb   :  { %v1084_v11 = vpop.xlane.xlu1 %1083 }
0x15fc   :  { %1292 = vpow2.f32 %v1068_v13 }
0x1606   :  { %v1293_v7 = vpop.eup %1292 }
0x1607   :  { %1070 = vadd.xlane.f32.xlu0 %v1293_v7 }
0x1694   :  { %v1071_v28 = vpop.xlane.xlu0 %1070 }
0x1695   :  { %1294 = vlog2.f32 %v1071_v28 }
0x169f   :  { %v1295_v8 = vpop.eup %1294 }
0x16a0   :  { %v1073_v15 = vmul.f32 0.6931472, %v1295_v8 }
0x16a2   :  { %v1074_v39 = vadd.f32 %v1073_v15, %v1066_v10 }
0x16a4   :  { %v1085_v14 = vsub.f32 %v1074_v39, %v1084_v11 }
0x16a6   :  { %v1087_v18 = vsel %vm1086_vm7, %v1085_v14, 0.0 }
0x16a7   :  { %1088 = vadd.xlane.f32.xlu1 %v1087_v18 }
0x1734   :  { %v1089_v20 = vpop.xlane.xlu1 %1088 }
0x1735   :  { %v1090_v21 = vrot.slane %v1089_v20, 4 }
0x1737   :  { %v1091_v0 = vadd.f32 %v1090_v21, %v1089_v20 }
0x1739   :  { %v1092_v29 = vrot.slane %v1091_v0, 2 }
0x173b   :  { %v1093_v22 = vadd.f32 %v1092_v29, %v1091_v0 }
0x173d   :  { %v1094_v23 = vrot.slane %v1093_v22, 1 }
0x173f   :  { %v1095_v24 = vadd.f32 %v1094_v23, %v1093_v22 }
0x1741   :  { %1197 = vpush %v1095_v24 }
0x1772   :  { %s1198_s5 = spop %1197 }
0x1773   :  { %1098 = sst [smem:[#allocation2]] %s1198_s5 }
0x1774   :  { %1305 = shalt.err (!%p1302_p2)
}
0x1775   :  { %s1316_s9 = smov [#allocation2]  }
0x1776   :  { %1106 = dma.smem_to_hbm %s1316_s9, 16, %s1666_s7, [#allocation3]  }
0x1777   :  { %1306 = dma.done.wait [#allocation3], 16  }
0x1778   :  { %1307 = vsyncadd [#allocation3], 4294967280 }
0x1779   :  { %1110 = sfence }
0x177a   :  { %1111 = vsyncpa [#allocation3], 1 }

</bundles_post_ra>
